<compile_context>
chip_gen: v5e
topology: v5e:2x2
jax: 0.10.0
libtpu: 0.0.40
codegen_flags: <defaults>
</compile_context>

<pallas_src>
import functools

import jax
import jax.numpy as jnp
from jax.experimental import pallas as pl
from jax.experimental.pallas import tpu as pltpu


def vae_kernel(x_ref, eps_ref,
               w_enc_ref, b_enc_ref,
               w_head_ref, b_head_ref,
               w_d1_ref, b_d1_ref,
               w_d2_ref, b_d2_ref,
               xr_ref, mulv_ref,
               *, z_pad):
    # encoder hidden:  h = relu(x @ W_enc + b_enc)   (bf16 MXU inputs, f32 acc)
    h = jnp.dot(x_ref[...], w_enc_ref[...],
                preferred_element_type=jnp.float32) + b_enc_ref[...]
    h = jnp.maximum(h, 0.0)

    # fused, lane-padded mu | log_var head: one matmul -> [TB, 2*z_pad]
    mulv = jnp.dot(h.astype(jnp.bfloat16), w_head_ref[...],
                   preferred_element_type=jnp.float32) + b_head_ref[...]
    mu = mulv[:, :z_pad]       # slice at a 128-lane tile boundary (no lane-select)
    lv = mulv[:, z_pad:]

    # reparameterize: z = mu + eps * exp(log_var / 2), eps ~ U[0,1) (torch.rand_like)
    # padded lanes: mu = lv = eps = 0  ->  z padded lanes are 0.
    z = mu + eps_ref[...] * jnp.exp(lv * 0.5)

    # decoder: relu(z @ W_d1 + b_d1) @ W_d2 + b_d2   (output_fn=None)
    h2 = jnp.dot(z.astype(jnp.bfloat16), w_d1_ref[...],
                 preferred_element_type=jnp.float32) + b_d1_ref[...]
    h2 = jnp.maximum(h2, 0.0)
    xr = jnp.dot(h2.astype(jnp.bfloat16), w_d2_ref[...],
                 preferred_element_type=jnp.float32) + b_d2_ref[...]

    xr_ref[...] = xr.astype(xr_ref.dtype)
    mulv_ref[...] = mulv.astype(mulv_ref.dtype)


def _resident(arr):
    # Weight / bias: constant block index -> DMA'd once, stays resident in VMEM.
    return pl.BlockSpec(arr.shape, lambda i: (0, 0))


def _round_up(n, m):
    return ((n + m - 1) // m) * m


def vae_forward(x, eps, params, *, batch_tile=512):
    """x: [B, in_features] f32, eps: [B, z_dim] f32 ~ U[0,1).

    params: dict of (in, out) weights (PyTorch W.T) and (1, out) biases, f32.
    Returns (x_reconst, mu, log_var), all f32.
    """
    B, in_features = x.shape
    h_dim = params["w_enc"].shape[1]
    z_dim = params["w_mu"].shape[1]
    z_pad = _round_up(z_dim, 128)

    # --- fuse mu | log_var head, each padded to a full 128-lane tile --------
    def pad_cols(a):
        return jnp.pad(a, ((0, 0), (0, z_pad - a.shape[1])))

    w_head = jnp.concatenate([pad_cols(params["w_mu"]), pad_cols(params["w_lv"])], axis=1)
    b_head = jnp.concatenate([pad_cols(params["b_mu"]), pad_cols(params["b_lv"])], axis=1)
    # decoder input padded with zero rows -> full-depth contraction, numerics unchanged
    w_d1 = jnp.pad(params["w_d1"], ((0, z_pad - z_dim), (0, 0)))

    # --- bf16 operands feed the MXU; biases & eps stay f32 ------------------
    x = x.astype(jnp.bfloat16)                    # halves streamed-input bytes
    w_enc = params["w_enc"].astype(jnp.bfloat16)
    w_head = w_head.astype(jnp.bfloat16)
    w_d1 = w_d1.astype(jnp.bfloat16)
    w_d2 = params["w_d2"].astype(jnp.bfloat16)

    # eps: lane-dense stream [B, z_pad] (extra lanes are zero)
    eps = jnp.pad(eps, ((0, 0), (0, z_pad - z_dim)))

    # --- batch tiling: pad B to x8, pick tile, keep grid >= 2 when possible -
    b_pad8 = _round_up(B, 8)
    tb = min(batch_tile, b_pad8)
    if b_pad8 // tb < 2 and b_pad8 >= 16:
        # keep >= 2 grid steps so the "parallel" axis shards across both TCs (v7x)
        tb = _round_up(pl.cdiv(b_pad8, 2), 8)
    Bp = _round_up(b_pad8, tb)
    if Bp != B:
        x = jnp.pad(x, ((0, Bp - B), (0, 0)))
        eps = jnp.pad(eps, ((0, Bp - B), (0, 0)))
    grid = (Bp // tb,)

    # --- explicit VMEM budget (double-buffered streams + resident weights) --
    stream = 2 * (tb * in_features * 2      # x (bf16)
                  + tb * z_pad * 4          # eps
                  + tb * in_features * 4    # x_reconst
                  + tb * 2 * z_pad * 4)     # mu | log_var
    resident = 2 * (in_features * h_dim * 2 + h_dim * 4
                    + h_dim * 2 * z_pad * 2 + 2 * z_pad * 4
                    + z_pad * h_dim * 2 + h_dim * 4
                    + h_dim * in_features * 2 + in_features * 4)
    vmem_limit = min(max(2 * (stream + resident) + (4 << 20), 32 << 20), 40 << 20)

    grid_spec = pltpu.PrefetchScalarGridSpec(
        num_scalar_prefetch=0,
        grid=grid,
        in_specs=[
            pl.BlockSpec((tb, in_features), lambda i: (i, 0)),   # x      (streamed, bf16)
            pl.BlockSpec((tb, z_pad), lambda i: (i, 0)),         # eps    (streamed, f32)
            _resident(w_enc), _resident(params["b_enc"]),        # weights (resident)
            _resident(w_head), _resident(b_head),
            _resident(w_d1), _resident(params["b_d1"]),
            _resident(w_d2), _resident(params["b_d2"]),
        ],
        out_specs=[
            pl.BlockSpec((tb, in_features), lambda i: (i, 0)),   # x_reconst
            pl.BlockSpec((tb, 2 * z_pad), lambda i: (i, 0)),     # mu | log_var (lane-dense)
        ],
    )

    out_shape = (
        jax.ShapeDtypeStruct((Bp, in_features), jnp.float32),
        jax.ShapeDtypeStruct((Bp, 2 * z_pad), jnp.float32),
    )

    xr, mulv = pl.pallas_call(
        functools.partial(vae_kernel, z_pad=z_pad),
        out_shape=out_shape,
        grid_spec=grid_spec,
        compiler_params=pltpu.CompilerParams(
            dimension_semantics=("parallel",),
            vmem_limit_bytes=int(vmem_limit),
        ),
    )(x, eps,
      w_enc, params["b_enc"],
      w_head, b_head,
      w_d1, params["b_d1"],
      w_d2, params["b_d2"])

    xr = xr[:B]
    mu = mulv[:B, :z_dim]
    lv = mulv[:B, z_pad:z_pad + z_dim]
    return xr, mu, lv


def init_params(key, in_features, h_dim, z_dim):
    ks = jax.random.split(key, 10)

    def lin(kw, kb, fan_in, fan_out):
        # deterministic init; weight stored as (in, out) == PyTorch W.T
        w = jax.random.normal(kw, (fan_in, fan_out), jnp.float32) * 0.1
        b = jax.random.normal(kb, (1, fan_out), jnp.float32) * 0.1
        return w, b

    w_enc, b_enc = lin(ks[0], ks[1], in_features, h_dim)
    w_mu, b_mu = lin(ks[2], ks[3], h_dim, z_dim)
    w_lv, b_lv = lin(ks[4], ks[5], h_dim, z_dim)
    w_d1, b_d1 = lin(ks[6], ks[7], z_dim, h_dim)
    w_d2, b_d2 = lin(ks[8], ks[9], h_dim, in_features)
    return dict(w_enc=w_enc, b_enc=b_enc, w_mu=w_mu, b_mu=b_mu,
                w_lv=w_lv, b_lv=b_lv, w_d1=w_d1, b_d1=b_d1,
                w_d2=w_d2, b_d2=b_d2)


def vae_ref(x, eps, p):
    # pure-JAX reference mirroring the kernel's bf16-MXU / f32-accumulate math
    bf, f32 = jnp.bfloat16, jnp.float32
    h = jnp.dot(x.astype(bf), p["w_enc"].astype(bf), preferred_element_type=f32) + p["b_enc"]
    h = jnp.maximum(h, 0.0)
    mu = jnp.dot(h.astype(bf), p["w_mu"].astype(bf), preferred_element_type=f32) + p["b_mu"]
    lv = jnp.dot(h.astype(bf), p["w_lv"].astype(bf), preferred_element_type=f32) + p["b_lv"]
    z = mu + eps * jnp.exp(lv * 0.5)
    h2 = jnp.dot(z.astype(bf), p["w_d1"].astype(bf), preferred_element_type=f32) + p["b_d1"]
    h2 = jnp.maximum(h2, 0.0)
    xr = jnp.dot(h2.astype(bf), p["w_d2"].astype(bf), preferred_element_type=f32) + p["b_d2"]
    return xr, mu, lv


if __name__ == "__main__":
    # small but MXU/lane-friendly shapes; auto tile split -> grid of 2 steps
    B, in_features, h_dim, z_dim = 256, 128, 256, 32

    key = jax.random.PRNGKey(0)
    k_x, k_eps, k_p = jax.random.split(key, 3)

    x = jax.random.normal(k_x, (B, in_features), jnp.float32)
    eps = jax.random.uniform(k_eps, (B, z_dim), jnp.float32)  # torch.rand_like -> U[0,1)
    params = init_params(k_p, in_features, h_dim, z_dim)

    x_reconst, mu, log_var = vae_forward(x, eps, params)
    jax.block_until_ready((x_reconst, mu, log_var))

    xr_r, mu_r, lv_r = vae_ref(x, eps, params)
    assert jnp.allclose(mu, mu_r, atol=2e-3, rtol=2e-3)
    assert jnp.allclose(log_var, lv_r, atol=2e-3, rtol=2e-3)
    assert jnp.allclose(x_reconst, xr_r, atol=2e-3, rtol=2e-3)

    print("KERNEL_OK")
</pallas_src>

<mosaic_0001>
module attributes {stable_mosaic.version = 11 : i64} {
  func.func @vae_kernel(%arg0: i32, %arg1: memref<128x128xbf16, #tpu.memory_space<vmem>>, %arg2: memref<128x128xf32, #tpu.memory_space<vmem>>, %arg3: memref<128x256xbf16, #tpu.memory_space<vmem>>, %arg4: memref<1x256xf32, #tpu.memory_space<vmem>>, %arg5: memref<256x256xbf16, #tpu.memory_space<vmem>>, %arg6: memref<1x256xf32, #tpu.memory_space<vmem>>, %arg7: memref<128x256xbf16, #tpu.memory_space<vmem>>, %arg8: memref<1x256xf32, #tpu.memory_space<vmem>>, %arg9: memref<256x128xbf16, #tpu.memory_space<vmem>>, %arg10: memref<1x128xf32, #tpu.memory_space<vmem>>, %arg11: memref<128x128xf32, #tpu.memory_space<vmem>>, %arg12: memref<128x256xf32, #tpu.memory_space<vmem>>) attributes {dimension_semantics = [#tpu.dimension_semantics<parallel>], iteration_bounds = array<i64: 2>, scalar_prefetch = 0 : i64, scratch_operands = 0 : i64, tpu.core_type = #tpu.core_type<tc>, window_params = [{transform_indices = @transform_0, window_bounds = array<i64: 128, 128>}, {transform_indices = @transform_1, window_bounds = array<i64: 128, 128>}, {pipeline_mode = #tpu.pipeline_mode<synchronous>, transform_indices = @transform_2, window_bounds = array<i64: 128, 256>}, {pipeline_mode = #tpu.pipeline_mode<synchronous>, transform_indices = @transform_3, window_bounds = array<i64: 1, 256>}, {pipeline_mode = #tpu.pipeline_mode<synchronous>, transform_indices = @transform_4, window_bounds = array<i64: 256, 256>}, {pipeline_mode = #tpu.pipeline_mode<synchronous>, transform_indices = @transform_5, window_bounds = array<i64: 1, 256>}, {pipeline_mode = #tpu.pipeline_mode<synchronous>, transform_indices = @transform_6, window_bounds = array<i64: 128, 256>}, {pipeline_mode = #tpu.pipeline_mode<synchronous>, transform_indices = @transform_7, window_bounds = array<i64: 1, 256>}, {pipeline_mode = #tpu.pipeline_mode<synchronous>, transform_indices = @transform_8, window_bounds = array<i64: 256, 128>}, {pipeline_mode = #tpu.pipeline_mode<synchronous>, transform_indices = @transform_9, window_bounds = array<i64: 1, 128>}, {transform_indices = @transform_10, window_bounds = array<i64: 128, 128>}, {transform_indices = @transform_11, window_bounds = array<i64: 128, 256>}]} {
    %c0 = arith.constant 0 : index
    %c0_0 = arith.constant 0 : index
    %0 = vector.load %arg1[%c0, %c0_0] : memref<128x128xbf16, #tpu.memory_space<vmem>>, vector<128x128xbf16>
    %c0_1 = arith.constant 0 : index
    %c0_2 = arith.constant 0 : index
    %1 = vector.load %arg3[%c0_1, %c0_2] : memref<128x256xbf16, #tpu.memory_space<vmem>>, vector<128x256xbf16>
    %cst = arith.constant dense<0.000000e+00> : vector<128x256xf32>
    %2 = tpu.matmul %0, %1, %cst {dimension_numbers = #tpu.dot_dimension_numbers<[1], [0], [0], [1], [0, 0, 1, 1], [], []>} : vector<128x128xbf16>, vector<128x256xbf16>, vector<128x256xf32> -> vector<128x256xf32>
    %c0_3 = arith.constant 0 : index
    %c0_4 = arith.constant 0 : index
    %3 = vector.load %arg4[%c0_3, %c0_4] : memref<1x256xf32, #tpu.memory_space<vmem>>, vector<1x256xf32>
    %4 = vector.broadcast %3 : vector<1x256xf32> to vector<128x256xf32>
    %5 = arith.addf %2, %4 : vector<128x256xf32>
    %cst_5 = arith.constant 0.000000e+00 : f32
    %6 = vector.broadcast %cst_5 : f32 to vector<128x256xf32>
    %7 = arith.maximumf %5, %6 : vector<128x256xf32>
    %8 = arith.truncf %7 : vector<128x256xf32> to vector<128x256xbf16>
    %c0_6 = arith.constant 0 : index
    %c0_7 = arith.constant 0 : index
    %9 = vector.load %arg5[%c0_6, %c0_7] : memref<256x256xbf16, #tpu.memory_space<vmem>>, vector<256x256xbf16>
    %cst_8 = arith.constant dense<0.000000e+00> : vector<128x256xf32>
    %10 = tpu.matmul %8, %9, %cst_8 {dimension_numbers = #tpu.dot_dimension_numbers<[1], [0], [0], [1], [0, 0, 1, 1], [], []>} : vector<128x256xbf16>, vector<256x256xbf16>, vector<128x256xf32> -> vector<128x256xf32>
    %c0_9 = arith.constant 0 : index
    %c0_10 = arith.constant 0 : index
    %11 = vector.load %arg6[%c0_9, %c0_10] : memref<1x256xf32, #tpu.memory_space<vmem>>, vector<1x256xf32>
    %12 = vector.broadcast %11 : vector<1x256xf32> to vector<128x256xf32>
    %13 = arith.addf %10, %12 : vector<128x256xf32>
    %14 = vector.extract_strided_slice %13 {offsets = [0, 0], sizes = [128, 128], strides = [1, 1]} : vector<128x256xf32> to vector<128x128xf32>
    %15 = vector.extract_strided_slice %13 {offsets = [0, 128], sizes = [128, 128], strides = [1, 1]} : vector<128x256xf32> to vector<128x128xf32>
    %c0_11 = arith.constant 0 : index
    %c0_12 = arith.constant 0 : index
    %16 = vector.load %arg2[%c0_11, %c0_12] : memref<128x128xf32, #tpu.memory_space<vmem>>, vector<128x128xf32>
    %cst_13 = arith.constant 5.000000e-01 : f32
    %17 = vector.broadcast %cst_13 : f32 to vector<128x128xf32>
    %18 = arith.mulf %15, %17 : vector<128x128xf32>
    %19 = math.exp %18 : vector<128x128xf32>
    %20 = arith.mulf %16, %19 : vector<128x128xf32>
    %21 = arith.addf %14, %20 : vector<128x128xf32>
    %22 = arith.truncf %21 : vector<128x128xf32> to vector<128x128xbf16>
    %c0_14 = arith.constant 0 : index
    %c0_15 = arith.constant 0 : index
    %23 = vector.load %arg7[%c0_14, %c0_15] : memref<128x256xbf16, #tpu.memory_space<vmem>>, vector<128x256xbf16>
    %cst_16 = arith.constant dense<0.000000e+00> : vector<128x256xf32>
    %24 = tpu.matmul %22, %23, %cst_16 {dimension_numbers = #tpu.dot_dimension_numbers<[1], [0], [0], [1], [0, 0, 1, 1], [], []>} : vector<128x128xbf16>, vector<128x256xbf16>, vector<128x256xf32> -> vector<128x256xf32>
    %c0_17 = arith.constant 0 : index
    %c0_18 = arith.constant 0 : index
    %25 = vector.load %arg8[%c0_17, %c0_18] : memref<1x256xf32, #tpu.memory_space<vmem>>, vector<1x256xf32>
    %26 = vector.broadcast %25 : vector<1x256xf32> to vector<128x256xf32>
    %27 = arith.addf %24, %26 : vector<128x256xf32>
    %cst_19 = arith.constant 0.000000e+00 : f32
    %28 = vector.broadcast %cst_19 : f32 to vector<128x256xf32>
    %29 = arith.maximumf %27, %28 : vector<128x256xf32>
    %30 = arith.truncf %29 : vector<128x256xf32> to vector<128x256xbf16>
    %c0_20 = arith.constant 0 : index
    %c0_21 = arith.constant 0 : index
    %31 = vector.load %arg9[%c0_20, %c0_21] : memref<256x128xbf16, #tpu.memory_space<vmem>>, vector<256x128xbf16>
    %cst_22 = arith.constant dense<0.000000e+00> : vector<128x128xf32>
    %32 = tpu.matmul %30, %31, %cst_22 {dimension_numbers = #tpu.dot_dimension_numbers<[1], [0], [0], [1], [0, 0, 1, 1], [], []>} : vector<128x256xbf16>, vector<256x128xbf16>, vector<128x128xf32> -> vector<128x128xf32>
    %c0_23 = arith.constant 0 : index
    %c0_24 = arith.constant 0 : index
    %33 = vector.load %arg10[%c0_23, %c0_24] : memref<1x128xf32, #tpu.memory_space<vmem>>, vector<1x128xf32>
    %34 = vector.broadcast %33 : vector<1x128xf32> to vector<128x128xf32>
    %35 = arith.addf %32, %34 : vector<128x128xf32>
    %c0_25 = arith.constant 0 : index
    %c0_26 = arith.constant 0 : index
    %36 = vector.load %arg11[%c0_25, %c0_26] : memref<128x128xf32, #tpu.memory_space<vmem>>, vector<128x128xf32>
    tpu.vector_store %arg11[%c0_25, %c0_26], %35 {strides = array<i32>} : memref<128x128xf32, #tpu.memory_space<vmem>>, vector<128x128xf32>,
    %c0_27 = arith.constant 0 : index
    %c0_28 = arith.constant 0 : index
    %37 = vector.load %arg12[%c0_27, %c0_28] : memref<128x256xf32, #tpu.memory_space<vmem>>, vector<128x256xf32>
    tpu.vector_store %arg12[%c0_27, %c0_28], %13 {strides = array<i32>} : memref<128x256xf32, #tpu.memory_space<vmem>>, vector<128x256xf32>,
    return
  }
  func.func @transform_0(%arg0: i32) -> (i32, i32) {
    %c0_i32 = arith.constant 0 : i32
    %c0_i32_0 = arith.constant 0 : i32
    return %arg0, %c0_i32 : i32, i32
  }
  func.func @transform_1(%arg0: i32) -> (i32, i32) {
    %c0_i32 = arith.constant 0 : i32
    %c0_i32_0 = arith.constant 0 : i32
    return %arg0, %c0_i32 : i32, i32
  }
  func.func @transform_2(%arg0: i32) -> (i32, i32) {
    %c0_i32 = arith.constant 0 : i32
    %c0_i32_0 = arith.constant 0 : i32
    %c0_i32_1 = arith.constant 0 : i32
    return %c0_i32, %c0_i32_0 : i32, i32
  }
  func.func @transform_3(%arg0: i32) -> (i32, i32) {
    %c0_i32 = arith.constant 0 : i32
    %c0_i32_0 = arith.constant 0 : i32
    %c0_i32_1 = arith.constant 0 : i32
    return %c0_i32, %c0_i32_0 : i32, i32
  }
  func.func @transform_4(%arg0: i32) -> (i32, i32) {
    %c0_i32 = arith.constant 0 : i32
    %c0_i32_0 = arith.constant 0 : i32
    %c0_i32_1 = arith.constant 0 : i32
    return %c0_i32, %c0_i32_0 : i32, i32
  }
  func.func @transform_5(%arg0: i32) -> (i32, i32) {
    %c0_i32 = arith.constant 0 : i32
    %c0_i32_0 = arith.constant 0 : i32
    %c0_i32_1 = arith.constant 0 : i32
    return %c0_i32, %c0_i32_0 : i32, i32
  }
  func.func @transform_6(%arg0: i32) -> (i32, i32) {
    %c0_i32 = arith.constant 0 : i32
    %c0_i32_0 = arith.constant 0 : i32
    %c0_i32_1 = arith.constant 0 : i32
    return %c0_i32, %c0_i32_0 : i32, i32
  }
  func.func @transform_7(%arg0: i32) -> (i32, i32) {
    %c0_i32 = arith.constant 0 : i32
    %c0_i32_0 = arith.constant 0 : i32
    %c0_i32_1 = arith.constant 0 : i32
    return %c0_i32, %c0_i32_0 : i32, i32
  }
  func.func @transform_8(%arg0: i32) -> (i32, i32) {
    %c0_i32 = arith.constant 0 : i32
    %c0_i32_0 = arith.constant 0 : i32
    %c0_i32_1 = arith.constant 0 : i32
    return %c0_i32, %c0_i32_0 : i32, i32
  }
  func.func @transform_9(%arg0: i32) -> (i32, i32) {
    %c0_i32 = arith.constant 0 : i32
    %c0_i32_0 = arith.constant 0 : i32
    %c0_i32_1 = arith.constant 0 : i32
    return %c0_i32, %c0_i32_0 : i32, i32
  }
  func.func @transform_10(%arg0: i32) -> (i32, i32) {
    %c0_i32 = arith.constant 0 : i32
    %c0_i32_0 = arith.constant 0 : i32
    return %arg0, %c0_i32 : i32, i32
  }
  func.func @transform_11(%arg0: i32) -> (i32, i32) {
    %c0_i32 = arith.constant 0 : i32
    %c0_i32_0 = arith.constant 0 : i32
    return %arg0, %c0_i32 : i32, i32
  }
}

</mosaic_0001>

<bundles_post_ra>
// kernel: tpu_custom_call.1
= control target key start
LH: loop header
LB: loop body
LE: loop exit
PB: predicated region body
PF: predicated region fallthrough
CT: control target
= control target key end

     0   :  { %s3525_s0 = inlined_call_operand.hbm [shape: bf16[256,128], index: 0, kind: input, shape index: {}]   ;;  %s3526_s1 = inlined_call_operand.hbm [shape: f32[256,128], index: 1, kind: input, shape index: {}]   ;;  %s3527_s2 = inlined_call_operand.hbm [shape: bf16[128,256], index: 2, kind: input, shape index: {}]   ;;  %s3528_s3 = inlined_call_operand.vmem [shape: f32[1,256], index: 3, kind: input, shape index: {}]   ;;  %s3529_s4 = inlined_call_operand.hbm [shape: bf16[256,256], index: 4, kind: input, shape index: {}]   ;;  %s3530_s5 = inlined_call_operand.vmem [shape: f32[1,256], index: 5, kind: input, shape index: {}]   ;;  %s3531_s6 = inlined_call_operand.hbm [shape: bf16[128,256], index: 6, kind: input, shape index: {}]   ;;  %s3532_s7 = inlined_call_operand.vmem [shape: f32[1,256], index: 7, kind: input, shape index: {}]   ;;  %s3533_s8 = inlined_call_operand.hbm [shape: bf16[256,128], index: 8, kind: input, shape index: {}]   ;;  %s3534_s9 = inlined_call_operand.vmem [shape: f32[1,128], index: 9, kind: input, shape index: {}]   ;;  %s3535_s10 = inlined_call_operand.hbm [shape: f32[256,128], index: 10, kind: output, shape index: {0}]   ;;  %s3536_s11 = inlined_call_operand.hbm [shape: f32[256,256], index: 11, kind: output, shape index: {1}]  }
   0x1   :  { %3547 = sst [smem:[#allocation28_spill]] %s3527_s2 }
   0x2   :  { %3548 = sst [smem:[#allocation29_spill]] %s3529_s4 }
   0x3   :  { %3549 = sst [smem:[#allocation30_spill]] %s3531_s6 }
   0x4   :  { %3550 = sst [smem:[#allocation31_spill]] %s3533_s8 }
   0x5   :  { %3551 = sst [smem:[#allocation32_spill]] %s3535_s10 }
   0x6   :  { %17 = vsyncpa [#allocation3], 0 }
   0x7   :  { %19 = vsyncpa [#allocation3 + $0x1], 0 }
   0x8   :  { %20 = vsyncpa [#allocation6], 0 }
   0x9   :  { %22 = vsyncpa [#allocation6 + $0x1], 0 }
   0xa   :  { %23 = vsyncpa [#allocation9], 0 }
   0xb   :  { %24 = vsyncpa [#allocation12], 0 }
   0xc   :  { %25 = vsyncpa [#allocation4], 0 }
   0xd   :  { %27 = vsyncpa [#allocation4 + $0x1], 0 }
   0xe   :  { %28 = vsyncpa [#allocation15], 0 }
   0xf   :  { %30 = vsyncpa [#allocation15 + $0x1], 0  ;;  %s3070_s17 = smov 0   ;;  %s3072_s18 = smov 0  }
  0x10   :  { %s3074_s19 = smov 0   ;;  %s3076_s20 = smov 0  }
  0x11 LB: > { %3552 = sst [smem:[#allocation23_spill]] %s2984_s17  ;;  %s3091_s21 = sadd.s32 4294967295, %s2996_s20   ;;  %s2996_s20 = sphi %s3076_s20, %s3575_s20   ;;  %s2992_s19 = sphi %s3074_s19, %s3577_s19   ;;  %s2988_s18 = sphi %s3072_s18, %s3579_s18   ;;  %s2984_s17 = sphi %s3070_s17, %s3578_s17  }
  0x12   : > { %3553 = sst [smem:[#allocation24_spill]] %s2992_s19  ;;  %s2072_s22 = sadd.s32 4294967294, %s2996_s20  }
  0x13   : > { %p56_p0 = scmp.ne.s32.totalorder %s2988_s18, %s2984_s17  ;;  %p57_p1 = scmp.eq.s32.totalorder %s3091_s21, 0 }
  0x14   : > { %p274_p2 = scmp.eq.s32.totalorder %s3091_s21, 1  ;;  %p280_p3 = scmp.eq.s32.totalorder %s2072_s22, 1 }
  0x15   : > { %p3100_p4 = por %p57_p1, %p56_p0  ;;  %p2073_p5 = scmp.ge.s32.totalorder %s2996_s20, 1 }
  0x16   : > { %p3105_p6 = por %p280_p3, %p56_p0  ;;  %p313_p7 = scmp.lt.s32.totalorder %s2996_s20, 3 }
  0x17   : > { %s3557_s2 = sld [smem:[#allocation28_spill]]  ;;  %s2998_s29 = smov [#allocation7]  }
  0x18   : > { %s3555_s24 = scalar_select %p3105_p6, 1, 0 }
  0x19   : > { %p3113_p8 = pnand %p2073_p5, %p313_p7  ;;  %s326_s30 = sshll.u32 %s2998_s29, 4  ;;  %s327_s30 = int_to_ptr.vmem [resolvable:$true] %s326_s30 }
  0x1a   : > { %3556 = sst [smem:[#allocation25_spill]] %s3555_s24  ;;  %s3538_s16 = smov 128  }
  0x1b   : > { %p2588_p9 = pneg %p3113_p8  ;;  %s3560_s4 = sld [smem:[#allocation29_spill]] }
  0x1c   : > { %s3539_s22 = smov 8   ;;  %s3001_s25 = smov [#allocation8]  }
  0x1d   : > { %s324_s27 = sshll.u32 %s3557_s2, 4  ;;  %p3121_p10 = pnand %p2588_p9, %p57_p1  ;;  %s325_s27 = int_to_ptr.hbm [resolvable:$true] %s324_s27 }
  0x1e   : > { %s343_s26 = sshll.u32 %s3001_s25, 4  ;;  %s3561_s6 = sld [smem:[#allocation30_spill]]  ;;  %s344_s26 = int_to_ptr.vmem [resolvable:$true] %s343_s26 }
  0x1f   : > { %2591 = dma.hbm_to_vmem [thread:$0]  (!%p3121_p10), %s325_s27, 2048, %s327_s30, [#allocation6], %s3538_s16, %s3538_s16, %s3539_s22  }
  0x20   : > { %s3562_s8 = sld [smem:[#allocation31_spill]]  ;;  %s3002_s30 = smov [#allocation10]  }
  0x21   : > { %s341_s15 = sshll.u32 %s3560_s4, 4  ;;  %s360_s2 = sshll.u32 %s3002_s30, 4  ;;  %s342_s15 = int_to_ptr.hbm [resolvable:$true] %s341_s15  ;;  %s361_s2 = int_to_ptr.vmem [resolvable:$true] %s360_s2 }
  0x22   : > { %2594 = dma.hbm_to_vmem [thread:$0]  (!%p3121_p10), %s342_s15, 4096, %s344_s26, [#allocation9], %s3538_s16, %s3538_s16, %s3539_s22  }
  0x23   : > { %s3003_s15 = smov [#allocation11]   ;;  %s3540_s26 = smov 64  }
  0x24   : > { %s358_s24 = sshll.u32 %s3561_s6, 4  ;;  %s377_s25 = sshll.u32 %s3003_s15, 4  ;;  %s359_s24 = int_to_ptr.hbm [resolvable:$true] %s358_s24  ;;  %s378_s25 = int_to_ptr.vmem [resolvable:$true] %s377_s25 }
  0x25   : > { %2597 = dma.hbm_to_vmem [thread:$0]  (!%p3121_p10), %s359_s24, 2048, %s361_s2, [#allocation9], %s3538_s16, %s3538_s16, %s3539_s22  }
  0x26   : > { %s375_s27 = sshll.u32 %s3562_s8, 4  ;;  %s3541_s29 = smov 4   ;;  %s376_s27 = int_to_ptr.hbm [resolvable:$true] %s375_s27 }
  0x27   : > { %2600 = dma.hbm_to_vmem [thread:$0]  (!%p3121_p10), %s376_s27, 2048, %s378_s25, [#allocation12], %s3540_s26, %s3540_s26, %s3541_s29  }
  0x28   : > { %s3156_s13 = sadd.s32 1, %s2996_s20   ;;  %s43_s30 = sadd.s32 1, %s2992_s19 }
  0x29   : > { %3563 = sst [smem:[#allocation26_spill]] %s3156_s13  ;;  %s40_s14 = ssub.s32 %s2996_s20, %s3156_s13 }
  0x2a   : > { %p41_p12 = scmp.eq.s32.totalorder %s40_s14, 0  ;;  %p50_p13 = scmp.ne.s32.totalorder %s2992_s19, %s2988_s18 }
  0x2b   : > { %p51_p0 = scmp.eq.s32.totalorder %s2996_s20, 0  ;;  %p2619_p7 = scmp.lt.s32.totalorder %s2996_s20, 2 }
  0x2c   : > { %s3165_s24 = scalar_select %p41_p12, %s2992_s19, %s43_s30  }
  0x2d   : > { %p52_p3 = por %p51_p0, %p50_p13  ;;  %p3169_p5 = por %p274_p2, %p50_p13 }
  0x2e   : > { %3564 = sst [smem:[#allocation27_spill]] %s3165_s24  ;;  %s3175_s12 = sand.u32 1, %s2992_s19  }
  0x2f   : > { %s2079_s27 = sshll.u32 %s3175_s12, 6  ;;  %s2455_s15 = sshll.u32 %s2996_s20, 6 }
  0x30   : > { %s403_s16 = scalar_lea.hbm %s3525_s0, %s2455_s15  ;;  %s398_s30 = scalar_lea.vmem [#allocation2], %s2079_s27 }
  0x31   : > { %s406_s22 = sshll.u32 %s398_s30, 4  ;;  %s404_s26 = sshll.u32 %s403_s16, 4  ;;  %s407_s22 = int_to_ptr.vmem [resolvable:$true] %s406_s22  ;;  %s405_s26 = int_to_ptr.hbm [resolvable:$true] %s404_s26 }
  0x32   : > { %p3182_p2 = pnand %p2619_p7, %p52_p3  ;;  %s416_s4 = sand.u32 1, %s2996_s20  }
  0x33   : > { %s2082_s6 = sshll.u32 %s3175_s12, 7  ;;  %s395_s8 = scalar_lea.sflag [#allocation3], %s3175_s12 }
  0x34   : > { %s2822_s24 = sshra.s32 %s405_s26, 4  ;;  %p2826_p10 = pneg %p3182_p2  ;;  %s2823_s24 = int_to_ptr.hbm [resolvable:$true] %s2822_s24 }
  0x35   : > { %s2824_s19 = scalar_lea.hbm %s2823_s24, 64  ;;  %s2829_s15 = scalar_lea.hbm %s3525_s0, 128 }
  0x36   : > { %p2825_p9 = scmp.ne.s32.totalorder %s2823_s24, %s2824_s19  ;;  %p2830_p0 = scmp.lt.s32.totalorder %s2823_s24, %s3525_s0 }
  0x37   : > { %p2831_p3 = scmp.lt.s32.totalorder %s2829_s15, %s2824_s19 }
  0x38   : > { %p2827_p12 = pnand %p2826_p10, %p2825_p9 }
  0x39   : > { %p2832_p7 = por %p2831_p3, %p2830_p0 }
  0x3a   : > { %p2828_p13 = pneg %p2827_p12 }
  0x3c   : > { %p2833_p11 = pnand %p2832_p7, %p2828_p13 }
  0x3e   : > { %2836 = shalt.err (!%p2833_p11)
}
  0x3f   : > { %s3567_s12 = smov 4   ;;  %s3568_s30 = smov 64  }
  0x40   : > { %2604 = dma.hbm_to_vmem [thread:$0]  (!%p3182_p2), %s405_s26, 1024, %s407_s22, %s395_s8, %s3568_s30, %s3568_s30, %s3567_s12  }
  0x41   : > { %s2456_s13 = sshll.u32 %s2996_s20, 7  ;;  %s420_s10 = scalar_lea.vmem [#allocation5], %s2082_s6 }
  0x42   : > { %s425_s27 = scalar_lea.hbm %s3526_s1, %s2456_s13  ;;  %s428_s25 = sshll.u32 %s420_s10, 4  ;;  %s429_s25 = int_to_ptr.vmem [resolvable:$true] %s428_s25 }
  0x43   : > { %s426_s24 = sshll.u32 %s425_s27, 4  ;;  %s417_s19 = scalar_lea.sflag [#allocation6], %s416_s4  ;;  %s427_s24 = int_to_ptr.hbm [resolvable:$true] %s426_s24 }
  0x44   : > { %s2852_s15 = sshra.s32 %s427_s24, 4  ;;  %s2859_s26 = scalar_lea.hbm %s3526_s1, 256  ;;  %s2853_s15 = int_to_ptr.hbm [resolvable:$true] %s2852_s15 }
  0x45   : > { %s2854_s14 = scalar_lea.hbm %s2853_s15, 128  ;;  %p2860_p13 = scmp.lt.s32.totalorder %s2853_s15, %s3526_s1 }
  0x46   : > { %p2855_p11 = scmp.ne.s32.totalorder %s2853_s15, %s2854_s14  ;;  %p2861_p0 = scmp.lt.s32.totalorder %s2859_s26, %s2854_s14 }
  0x48   : > { %p2857_p9 = pnand %p2855_p11, %p2826_p10  ;;  %p2862_p3 = por %p2861_p0, %p2860_p13 }
  0x4a   : > { %p2858_p12 = pneg %p2857_p9 }
  0x4c   : > { %p2863_p7 = pnand %p2862_p3, %p2858_p12 }
  0x4e   : > { %2866 = shalt.err (!%p2863_p7)
}
  0x4f   : > { %s3569_s4 = smov 8   ;;  %s3570_s6 = smov 128  }
  0x50   : > { %2607 = dma.hbm_to_vmem [thread:$0]  (!%p3182_p2), %s427_s24, 2048, %s429_s25, %s417_s19, %s3570_s6, %s3570_s6, %s3569_s4  }
  0x51   : > { %440 = sbr.rel (%p3113_p8) target bundleno = 825 (0x339), region = 60  ;;  %s3226_s10 = sand.u32 (!%p3113_p8), 1, %s2988_s18  }
  0x52   : > { %s2086_s12 = sshll.u32 (!%p3113_p8), %s3226_s10, 6  ;;  %s443_s30 = scalar_lea.sflag (!%p3113_p8), [#allocation3], %s3226_s10 }
  0x53   : > { %s3230_s16 = scalar_lea.vmem (!%p3113_p8), [#allocation2], %s2086_s12 }
  0x56   : > { %2955 = dma.done.wait (%p3100_p4), %s443_s30, 1024  }
  0x57   : > { %2957 = vsyncadd (%p3100_p4), %s443_s30, 4294966272  ;;  %s452_s28 = sand.u32 1, %s3091_s21   ;;  %s2087_s29 = sshll.u32 %s3226_s10, 7 }
  0x58   : > { %s453_s27 = scalar_lea.sflag [#allocation6], %s452_s28  ;;  %s3240_s25 = scalar_lea.vmem [#allocation5], %s2087_s29 }
  0x59   : > { %2959 = dma.done.wait (%p3100_p4), %s453_s27, 2048  }
  0x5a   : > { %2961 = vsyncadd (%p3100_p4), %s453_s27, 4294965248 }
  0x5b   : > { %2963 = dma.done.wait (%p57_p1), [#allocation6], 2048  }
  0x5c   : > { %2965 = vsyncadd (%p57_p1), [#allocation6], 4294965248 }
  0x5d   : > { %2967 = dma.done.wait (%p57_p1), [#allocation9], 6144  }
  0x5e   : > { %2969 = vsyncadd (%p57_p1), [#allocation9], 4294961152 }
  0x5f   : > { %2971 = dma.done.wait (%p57_p1), [#allocation12], 2048  }
  0x60   : > { %2973 = vsyncadd (%p57_p1), [#allocation12], 4294965248  ;;  %v2184_v0 = vld [vmem:[#allocation7 + $0x70] sm:$0xf]  ;;  %v2480_v1 = vld [vmem:[#allocation7 + $0x74] sm:$0xf0] }
  0x61   : > { %v2479_v2 = vld [vmem:[#allocation7 + $0x74] sm:$0xf]  ;;  %v2185_v3 = vor.u32 %v2480_v1, %v2184_v0  ;;  %v2186_v4 = vld [vmem:[#allocation7 + $0x78] sm:$0xf0]  ;;  %v2176_v5 = vld [vmem:[#allocation7 + $0x60] sm:$0xf] }
  0x62   : > { %v2478_v6 = vld [vmem:[#allocation7 + $0x64] sm:$0xf0]  ;;  %v2189_v7 = vor.u32 %v2479_v2, %v2186_v4  ;;  %v2477_v8 = vld [vmem:[#allocation7 + $0x64] sm:$0xf]  ;;  %v2178_v9 = vld [vmem:[#allocation7 + $0x68] sm:$0xf0] }
  0x63   : > { %696 = vmatpush.bf16.msra.mxu0 %v2185_v3  ;;  %v2177_v10 = vor.u32 %v2478_v6, %v2176_v5  ;;  %2548 = vmatpush.bf16.msra.mxu2 %v2185_v3  ;;  %v2181_v11 = vor.u32 %v2477_v8, %v2178_v9  ;;  %v2168_v12 = vld [vmem:[#allocation7 + $0x50] sm:$0xf]  ;;  %v2476_v13 = vld [vmem:[#allocation7 + $0x54] sm:$0xf0]  ;;  %v2475_v14 = vld [vmem:[#allocation7 + $0x54] sm:$0xf] }
  0x64   : > { %745 = vmatpush.bf16.msra.mxu1 %v2189_v7  ;;  %2556 = vmatpush.bf16.msra.mxu3 %v2189_v7  ;;  %v2170_v15 = vld [vmem:[#allocation7 + $0x58] sm:$0xf0]  ;;  %v2169_v16 = vor.u32 %v2476_v13, %v2168_v12  ;;  %v2160_v18 = vld [vmem:[#allocation7 + $0x40] sm:$0xf]  ;;  %v2474_v19 = vld [vmem:[#allocation7 + $0x44] sm:$0xf0] }
  0x65   : > { %v2173_v17 = vor.u32 %v2475_v14, %v2170_v15  ;;  %v2473_v20 = vld [vmem:[#allocation7 + $0x44] sm:$0xf]  ;;  %v2162_v21 = vld [vmem:[#allocation7 + $0x48] sm:$0xf0]  ;;  %v2161_v22 = vor.u32 %v2474_v19, %v2160_v18  ;;  %v2152_v24 = vld [vmem:[#allocation7 + $0x30] sm:$0xf] }
  0x66   : > { %v2165_v23 = vor.u32 %v2473_v20, %v2162_v21  ;;  %v2472_v25 = vld [vmem:[#allocation7 + $0x34] sm:$0xf0]  ;;  %v2471_v26 = vld [vmem:[#allocation7 + $0x34] sm:$0xf]  ;;  %v2154_v27 = vld [vmem:[#allocation7 + $0x38] sm:$0xf0] }
  0x67   : > { %697 = vmatpush.bf16.msra.mxu0 %v2177_v10  ;;  %2549 = vmatpush.bf16.msra.mxu2 %v2177_v10  ;;  %v2153_v28 = vor.u32 %v2472_v25, %v2152_v24  ;;  %v2157_v29 = vor.u32 %v2471_v26, %v2154_v27  ;;  %v2144_v30 = vld [vmem:[#allocation7 + $0x20] sm:$0xf]  ;;  %v2470_v31 = vld [vmem:[#allocation7 + $0x24] sm:$0xf0]  ;;  %v2469_v32 = vld [vmem:[#allocation7 + $0x24] sm:$0xf] }
  0x68   : > { %746 = vmatpush.bf16.msra.mxu1 %v2181_v11  ;;  %2557 = vmatpush.bf16.msra.mxu3 %v2181_v11  ;;  %v2146_v33 = vld [vmem:[#allocation7 + $0x28] sm:$0xf0]  ;;  %v2145_v34 = vor.u32 %v2470_v31, %v2144_v30  ;;  %v2136_v36 = vld [vmem:[#allocation7 + $0x10] sm:$0xf]  ;;  %v2468_v37 = vld [vmem:[#allocation7 + $0x14] sm:$0xf0] }
  0x69   : > { %v2149_v35 = vor.u32 %v2469_v32, %v2146_v33  ;;  %v2467_v38 = vld [vmem:[#allocation7 + $0x14] sm:$0xf]  ;;  %v2138_v39 = vld [vmem:[#allocation7 + $0x18] sm:$0xf0]  ;;  %v2137_v40 = vor.u32 %v2468_v37, %v2136_v36  ;;  %v2128_v42 = vld [vmem:[#allocation7] sm:$0xf] }
  0x6a   : > { %v2141_v41 = vor.u32 %v2467_v38, %v2138_v39  ;;  %v2466_v43 = vld [vmem:[#allocation7 + $0x4] sm:$0xf0]  ;;  %v2465_v44 = vld [vmem:[#allocation7 + $0x4] sm:$0xf]  ;;  %v2130_v45 = vld [vmem:[#allocation7 + $0x8] sm:$0xf0] }
  0x6b   : > { %698 = vmatpush.bf16.msra.mxu0 %v2169_v16  ;;  %2550 = vmatpush.bf16.msra.mxu2 %v2169_v16  ;;  %v2129_v46 = vor.u32 %v2466_v43, %v2128_v42  ;;  %v2133_v47 = vor.u32 %v2465_v44, %v2130_v45  ;;  %v2457_v48 = vld [vmem:[%s3230_s16] sm:$0xff]  ;;  %v2458_v49 = vld [vmem:[%s3230_s16 + $0x8] sm:$0xff]  ;;  %v2495_v51 = vld [vmem:[#allocation8 + $0x74] sm:$0xf]  ;;  %s2093_s14 = sshll.u32 %s3226_s10, 8  ;;  %s2547_s17 = sshll.u32 %s3091_s21, 8 }
  0x6c   : > { %747 = vmatpush.bf16.msra.mxu1 %v2173_v17  ;;  %2558 = vmatpush.bf16.msra.mxu3 %v2173_v17  ;;  %v2461_v50 = vld [vmem:[%s3230_s16 + $0x20] sm:$0xff]  ;;  %v2250_v52 = vld [vmem:[#allocation8 + $0x78] sm:$0xf0]  ;;  %v2511_v53 = vld [vmem:[#allocation8 + $0xf4] sm:$0xf]  ;;  %s3314_s8 = scalar_lea.vmem [#allocation14], %s2093_s14  ;;  %s1901_s30 = scalar_lea.hbm %s3536_s11, %s2547_s17 }
  0x6d   : > { %v2314_v54 = vld [vmem:[#allocation8 + $0xf8] sm:$0xf0]  ;;  %v2253_v55 = vor.u32 %v2495_v51, %v2250_v52  ;;  %v2248_v57 = vld [vmem:[#allocation8 + $0x70] sm:$0xf]  ;;  %v2496_v58 = vld [vmem:[#allocation8 + $0x74] sm:$0xf0] }
  0x6e   : > { %v2317_v56 = vor.u32 %v2511_v53, %v2314_v54  ;;  %v2249_v59 = vor.u32 %v2496_v58, %v2248_v57  ;;  %v2493_v60 = vld [vmem:[#allocation8 + $0x64] sm:$0xf]  ;;  %v2242_v61 = vld [vmem:[#allocation8 + $0x68] sm:$0xf0]  ;;  %v2312_v62 = vld [vmem:[#allocation8 + $0xf0] sm:$0xf] }
  0x6f   : > { %699 = vmatpush.bf16.msra.mxu0 %v2161_v22  ;;  %2551 = vmatpush.bf16.msra.mxu2 %v2161_v22  ;;  %v2245_v63 = vor.u32 %v2493_v60, %v2242_v61  ;;  %v2512_v0 = vld [vmem:[#allocation8 + $0xf4] sm:$0xf0]  ;;  %v2509_v1 = vld [vmem:[#allocation8 + $0xe4] sm:$0xf]  ;;  %v2306_v2 = vld [vmem:[#allocation8 + $0xe8] sm:$0xf0] }
  0x70   : > { %748 = vmatpush.bf16.msra.mxu1 %v2165_v23  ;;  %2559 = vmatpush.bf16.msra.mxu3 %v2165_v23  ;;  %v2313_v3 = vor.u32 %v2512_v0, %v2312_v62  ;;  %v2309_v4 = vor.u32 %v2509_v1, %v2306_v2  ;;  %v2240_v5 = vld [vmem:[#allocation8 + $0x60] sm:$0xf]  ;;  %v2494_v6 = vld [vmem:[#allocation8 + $0x64] sm:$0xf0]  ;;  %v2491_v7 = vld [vmem:[#allocation8 + $0x54] sm:$0xf] }
  0x71   : > { %v2241_v8 = vor.u32 %v2494_v6, %v2240_v5  ;;  %v2234_v9 = vld [vmem:[#allocation8 + $0x58] sm:$0xf0]  ;;  %v2304_v10 = vld [vmem:[#allocation8 + $0xe0] sm:$0xf]  ;;  %v2510_v11 = vld [vmem:[#allocation8 + $0xe4] sm:$0xf0] }
  0x72   : > { %v2305_v12 = vor.u32 %v2510_v11, %v2304_v10  ;;  %v2507_v13 = vld [vmem:[#allocation8 + $0xd4] sm:$0xf]  ;;  %v2298_v14 = vld [vmem:[#allocation8 + $0xd8] sm:$0xf0]  ;;  %v2237_v15 = vor.u32 %v2491_v7, %v2234_v9  ;;  %v2462_v18 = vld [vmem:[%s3230_s16 + $0x28] sm:$0xff]  ;;  %s1904_s28 = sshll.u32 %s1901_s30, 4  ;;  %s1905_s28 = int_to_ptr.hbm [resolvable:$true] %s1904_s28 }
  0x73   : > { %700 = vmatpush.bf16.msra.mxu0 %v2153_v28  ;;  %2552 = vmatpush.bf16.msra.mxu2 %v2153_v28  ;;  %v2301_v16 = vor.u32 %v2507_v13, %v2298_v14  ;;  %v2459_v17 = vld [vmem:[%s3230_s16 + $0x10] sm:$0xff]  ;;  %v2492_v20 = vld [vmem:[#allocation8 + $0x54] sm:$0xf0]  ;;  %v2489_v21 = vld [vmem:[#allocation8 + $0x44] sm:$0xf]  ;;  %s1872_s27 = scalar_lea.sflag [#allocation15], %s3226_s10 }
  0x74   : > { %749 = vmatpush.bf16.msra.mxu1 %v2157_v29  ;;  %2560 = vmatpush.bf16.msra.mxu3 %v2157_v29  ;;  %v2232_v19 = vld [vmem:[#allocation8 + $0x50] sm:$0xf]  ;;  %v2226_v23 = vld [vmem:[#allocation8 + $0x48] sm:$0xf0]  ;;  %v2508_v25 = vld [vmem:[#allocation8 + $0xd4] sm:$0xf0] }
  0x75   : > { %v2233_v22 = vor.u32 %v2492_v20, %v2232_v19  ;;  %v2296_v24 = vld [vmem:[#allocation8 + $0xd0] sm:$0xf]  ;;  %v2229_v26 = vor.u32 %v2489_v21, %v2226_v23  ;;  %v2505_v28 = vld [vmem:[#allocation8 + $0xc4] sm:$0xf]  ;;  %v2290_v29 = vld [vmem:[#allocation8 + $0xc8] sm:$0xf0] }
  0x76   : > { %v2297_v27 = vor.u32 %v2508_v25, %v2296_v24  ;;  %v2224_v30 = vld [vmem:[#allocation8 + $0x40] sm:$0xf]  ;;  %v2293_v31 = vor.u32 %v2505_v28, %v2290_v29  ;;  %v2490_v32 = vld [vmem:[#allocation8 + $0x44] sm:$0xf0]  ;;  %v2487_v33 = vld [vmem:[#allocation8 + $0x34] sm:$0xf] }
  0x77   : > { %701 = vmatpush.bf16.msra.mxu0 %v2145_v34  ;;  %2553 = vmatpush.bf16.msra.mxu2 %v2145_v34  ;;  %v2218_v34 = vld [vmem:[#allocation8 + $0x38] sm:$0xf0]  ;;  %v2288_v37 = vld [vmem:[#allocation8 + $0xc0] sm:$0xf]  ;;  %v2506_v38 = vld [vmem:[#allocation8 + $0xc4] sm:$0xf0] }
  0x78   : > { %750 = vmatpush.bf16.msra.mxu1 %v2149_v35  ;;  %2561 = vmatpush.bf16.msra.mxu3 %v2149_v35  ;;  %v2225_v35 = vor.u32 %v2490_v32, %v2224_v30  ;;  %v2221_v36 = vor.u32 %v2487_v33, %v2218_v34  ;;  %v2503_v39 = vld [vmem:[#allocation8 + $0xb4] sm:$0xf]  ;;  %v2216_v42 = vld [vmem:[#allocation8 + $0x30] sm:$0xf]  ;;  %v2488_v43 = vld [vmem:[#allocation8 + $0x34] sm:$0xf0] }
  0x79   : > { %v2485_v45 = vld [vmem:[#allocation8 + $0x24] sm:$0xf]  ;;  %v2274_v51 = vld [vmem:[#allocation8 + $0xa8] sm:$0xf0]  ;;  %v2208_v54 = vld [vmem:[#allocation8 + $0x20] sm:$0xf] }
  0x7a   : > { %v2483_v58 = vld [vmem:[#allocation8 + $0x14] sm:$0xf]  ;;  %v2272_v0 = vld [vmem:[#allocation8 + $0xa0] sm:$0xf]  ;;  %v2502_v1 = vld [vmem:[#allocation8 + $0xa4] sm:$0xf0] }
  0x7b   : > { %702 = vmatpush.bf16.msra.mxu0 %v2137_v40  ;;  %2554 = vmatpush.bf16.msra.mxu2 %v2137_v40  ;;  %v2289_v40 = vor.u32 %v2506_v38, %v2288_v37  ;;  %v2463_v61 = vld [vmem:[%s3230_s16 + $0x30] sm:$0xff]  ;;  %v2273_v2 = vor.u32 %v2502_v1, %v2272_v0  ;;  %v2484_v7 = vld [vmem:[#allocation8 + $0x14] sm:$0xf0]  ;;  %v2194_v9 = vld [vmem:[#allocation8 + $0x8] sm:$0xf0]  ;;  %s2902_s15 = scalar_lea.hbm %s3536_s11, 512 }
  0x7c   : > { %751 = vmatpush.bf16.msra.mxu1 %v2141_v41  ;;  %2562 = vmatpush.bf16.msra.mxu3 %v2141_v41  ;;  %v2282_v41 = vld [vmem:[#allocation8 + $0xb8] sm:$0xf0]  ;;  %v2200_v5 = vld [vmem:[#allocation8 + $0x10] sm:$0xf]  ;;  %v2500_v13 = vld [vmem:[#allocation8 + $0x94] sm:$0xf0] }
  0x7d   : > { %v2285_v44 = vor.u32 %v2503_v39, %v2282_v41  ;;  %v2201_v10 = vor.u32 %v2484_v7, %v2200_v5  ;;  %v2482_v19 = vld [vmem:[#allocation8 + $0x4] sm:$0xf0]  ;;  %v2256_v20 = vld [vmem:[#allocation8 + $0x80] sm:$0xf]  ;;  %v2376_v39 = vld [vmem:[#allocation10 + $0x70] sm:$0xf] }
  0x7e   : > { %v2498_v21 = vld [vmem:[#allocation8 + $0x84] sm:$0xf0]  ;;  %v562_v24 = vld [vmem:[%s3528_s3] sm:$0x3]  ;;  %v2370_v0 = vld [vmem:[#allocation10 + $0x68] sm:$0xf0] }
  0x7f   : > { %703 = vmatpush.bf16.msra.mxu0 %v2129_v46  ;;  %2555 = vmatpush.bf16.msra.mxu2 %v2129_v46  ;;  %v2210_v46 = vld [vmem:[#allocation8 + $0x28] sm:$0xf0]  ;;  %v2257_v23 = vor.u32 %v2498_v21, %v2256_v20  ;;  %v3271_v28 = vperm.slane %v562_v24, 1  ;;  %v2524_v5 = vld [vmem:[#allocation10 + $0x54] sm:$0xf0] }
  0x80   : > { %752 = vmatpush.bf16.msra.mxu1 %v2133_v47  ;;  %2563 = vmatpush.bf16.msra.mxu3 %v2133_v47  ;;  %v2280_v47 = vld [vmem:[#allocation8 + $0xb0] sm:$0xf]  ;;  %v2213_v52 = vor.u32 %v2485_v45, %v2210_v46 }
  0x82   : > { %704 = vmatmul.bf16.vlgmr.msra.gmra.mxu0 %v2457_v48  ;;  %724 = vmatmul.bf16.vlgmr.msra.gmra.mxu2 %v2461_v50 }
  0x83   : > { %753 = vmatmul.bf16.vlgmr.msra.gmra.mxu1 %v2457_v48  ;;  %773 = vmatmul.bf16.vlgmr.msra.gmra.mxu3 %v2461_v50  ;;  %v2217_v48 = vor.u32 %v2488_v43, %v2216_v42  ;;  %v2501_v50 = vld [vmem:[#allocation8 + $0xa4] sm:$0xf]  ;;  %v2527_v43 = vld [vmem:[#allocation10 + $0x74] sm:$0xf] }
  0x84   : > { %1138 = vmatpush.bf16.msrb.mxu0 %v2253_v55  ;;  %1187 = vmatpush.bf16.msrb.mxu1 %v2317_v56  ;;  %v2486_v55 = vld [vmem:[#allocation8 + $0x24] sm:$0xf0]  ;;  %v2460_v56 = vld [vmem:[%s3230_s16 + $0x18] sm:$0xff]  ;;  %v2277_v57 = vor.u32 %v2501_v50, %v2274_v51 }
  0x85   : > { %1040 = vmatpush.bf16.msrb.mxu2 %v2249_v59  ;;  %1089 = vmatpush.bf16.msrb.mxu3 %v2313_v3  ;;  %v2202_v59 = vld [vmem:[#allocation8 + $0x18] sm:$0xf0]  ;;  %v2209_v60 = vor.u32 %v2486_v55, %v2208_v54  ;;  %v2499_v3 = vld [vmem:[#allocation8 + $0x94] sm:$0xf] }
  0x86   : > { %v2205_v62 = vor.u32 %v2483_v58, %v2202_v59  ;;  %v2368_v59 = vld [vmem:[#allocation10 + $0x60] sm:$0xf] }
  0x88   : > { %1139 = vmatpush.bf16.msrb.mxu0 %v2245_v63  ;;  %1188 = vmatpush.bf16.msrb.mxu1 %v2309_v4  ;;  %v2464_v63 = vld [vmem:[%s3230_s16 + $0x38] sm:$0xff]  ;;  %s1902_s16 = sshll.u32 %s3314_s8, 4  ;;  %s1903_s16 = int_to_ptr.vmem [resolvable:$true] %s1902_s16 }
  0x89   : > { %1041 = vmatpush.bf16.msrb.mxu2 %v2241_v8  ;;  %1090 = vmatpush.bf16.msrb.mxu3 %v2305_v12  ;;  %v2266_v4 = vld [vmem:[#allocation8 + $0x98] sm:$0xf0]  ;;  %v2481_v8 = vld [vmem:[#allocation8 + $0x4] sm:$0xf]  ;;  %v2264_v12 = vld [vmem:[#allocation8 + $0x90] sm:$0xf] }
  0x8a   : > { %v2269_v6 = vor.u32 %v2499_v3, %v2266_v4  ;;  %v2197_v11 = vor.u32 %v2481_v8, %v2194_v9  ;;  %v2265_v14 = vor.u32 %v2500_v13, %v2264_v12  ;;  %v2360_v4 = vld [vmem:[#allocation10 + $0x50] sm:$0xf]  ;;  %v2362_v9 = vld [vmem:[#allocation10 + $0x58] sm:$0xf0] }
  0x8b   : > { %v2361_v8 = vor.u32 %v2524_v5, %v2360_v4  ;;  %v2336_v5 = vld [vmem:[#allocation10 + $0x20] sm:$0xf] }
  0x8c   : > { %1140 = vmatpush.bf16.msrb.mxu0 %v2237_v15  ;;  %1189 = vmatpush.bf16.msrb.mxu1 %v2301_v16  ;;  %v2497_v15 = vld [vmem:[#allocation8 + $0x84] sm:$0xf]  ;;  %v2258_v16 = vld [vmem:[#allocation8 + $0x88] sm:$0xf0] }
  0x8d   : > { %1042 = vmatpush.bf16.msrb.mxu2 %v2233_v22  ;;  %1091 = vmatpush.bf16.msrb.mxu3 %v2297_v27  ;;  %v3269_v27 = vperm.slane %v562_v24, 0 }
  0x90   : > { %1141 = vmatpush.bf16.msrb.mxu0 %v2229_v26  ;;  %1190 = vmatpush.bf16.msrb.mxu1 %v2293_v31 }
  0x91   : > { %1043 = vmatpush.bf16.msrb.mxu2 %v2225_v35  ;;  %1092 = vmatpush.bf16.msrb.mxu3 %v2289_v40  ;;  %v2528_v40 = vld [vmem:[#allocation10 + $0x74] sm:$0xf0] }
  0x92   : > { %709 = vmatmul.bf16.gmra.mxu0 %v2458_v49  ;;  %729 = vmatmul.bf16.gmra.mxu2 %v2462_v18  ;;  %v2377_v42 = vor.u32 %v2528_v40, %v2376_v39 }
  0x93   : > { %758 = vmatmul.bf16.gmra.mxu1 %v2458_v49  ;;  %778 = vmatmul.bf16.gmra.mxu3 %v2462_v18  ;;  %v2504_v49 = vld [vmem:[#allocation8 + $0xb4] sm:$0xf0]  ;;  %v2261_v18 = vor.u32 %v2497_v15, %v2258_v16 }
  0x94   : > { %1142 = vmatpush.bf16.msrb.mxu0 %v2221_v36  ;;  %v2281_v53 = vor.u32 %v2504_v49, %v2280_v47  ;;  %1191 = vmatpush.bf16.msrb.mxu1 %v2285_v44  ;;  %v2378_v44 = vld [vmem:[#allocation10 + $0x78] sm:$0xf0] }
  0x95   : > { %1044 = vmatpush.bf16.msrb.mxu2 %v2217_v48  ;;  %v2381_v46 = vor.u32 %v2527_v43, %v2378_v44 }
  0x96   : > { %1093 = vmatpush.bf16.msrb.mxu3 %v2281_v53 }
  0x98   : > { %1143 = vmatpush.bf16.msrb.mxu0 %v2213_v52  ;;  %1192 = vmatpush.bf16.msrb.mxu1 %v2277_v57 }
  0x99   : > { %1045 = vmatpush.bf16.msrb.mxu2 %v2209_v60  ;;  %v2526_v60 = vld [vmem:[#allocation10 + $0x64] sm:$0xf0] }
  0x9a   : > { %1094 = vmatpush.bf16.msrb.mxu3 %v2273_v2 }
  0x9c   : > { %1144 = vmatpush.bf16.msrb.mxu0 %v2205_v62  ;;  %1193 = vmatpush.bf16.msrb.mxu1 %v2269_v6  ;;  %v2369_v62 = vor.u32 %v2526_v60, %v2368_v59  ;;  %v2523_v6 = vld [vmem:[#allocation10 + $0x54] sm:$0xf] }
  0x9d   : > { %1046 = vmatpush.bf16.msrb.mxu2 %v2201_v10  ;;  %v2365_v10 = vor.u32 %v2523_v6, %v2362_v9  ;;  %v2518_v6 = vld [vmem:[#allocation10 + $0x24] sm:$0xf0]  ;;  %v2338_v9 = vld [vmem:[#allocation10 + $0x28] sm:$0xf0] }
  0x9e   : > { %1095 = vmatpush.bf16.msrb.mxu3 %v2265_v14 }
  0xa0   : > { %1145 = vmatpush.bf16.msrb.mxu0 %v2197_v11  ;;  %1194 = vmatpush.bf16.msrb.mxu1 %v2261_v18 }
  0xa2   : > { %714 = vmatmul.bf16.gmra.mxu0 %v2459_v17  ;;  %734 = vmatmul.bf16.gmra.mxu2 %v2463_v61 }
  0xa3   : > { %763 = vmatmul.bf16.gmra.mxu1 %v2459_v17  ;;  %783 = vmatmul.bf16.gmra.mxu3 %v2463_v61  ;;  %v2192_v17 = vld [vmem:[#allocation8] sm:$0xf] }
  0xa4   : > { %v2193_v22 = vor.u32 %v2482_v19, %v2192_v17  ;;  %1096 = vmatpush.bf16.msrb.mxu3 %v2257_v23 }
  0xa6   : > { %1047 = vmatpush.bf16.msrb.mxu2 %v2193_v22 }
  0xa8   : > { %1491 = vmatpush.bf16.msra.mxu3 %v2381_v46 }
  0xaa   : > { %1442 = vmatpush.bf16.msra.mxu2 %v2377_v42 }
  0xae   : > { %1443 = vmatpush.bf16.msra.mxu2 %v2369_v62 }
  0xb2   : > { %719 = vmatmul.bf16.gmra.mxu0 %v2460_v56  ;;  %739 = vmatmul.bf16.gmra.mxu2 %v2464_v63 }
  0xb3   : > { %768 = vmatmul.bf16.gmra.mxu1 %v2460_v56  ;;  %788 = vmatmul.bf16.gmra.mxu3 %v2464_v63  ;;  %v2525_v63 = vld [vmem:[#allocation10 + $0x64] sm:$0xf] }
  0xb4   : > { %v2373_v2 = vor.u32 %v2525_v63, %v2370_v0  ;;  %1444 = vmatpush.bf16.msra.mxu2 %v2361_v8  ;;  %v2337_v8 = vor.u32 %v2518_v6, %v2336_v5 }
  0xb6   : > { %1492 = vmatpush.bf16.msra.mxu3 %v2373_v2 }
  0xba   : > { %1493 = vmatpush.bf16.msra.mxu3 %v2365_v10 }
  0xff   : > { %v705_v25 = vpop.f32.mrf.mxu0 }
 0x100   : > { %v754_v26 = vpop.f32.mrf.mxu1  ;;  %v706_v29 = vadd.f32 %v705_v25, %v3269_v27 }
 0x101   : > { %v755_v30 = vadd.f32 %v754_v26, %v3271_v28  ;;  %v2352_v26 = vld [vmem:[#allocation10 + $0x40] sm:$0xf] }
 0x102   : > { %v794_v35 = vmax.f32 %v706_v29, 0.0  ;;  %v2522_v29 = vld [vmem:[#allocation10 + $0x44] sm:$0xf0] }
 0x103   : > { %v795_v37 = vmax.f32 %v755_v30, 0.0  ;;  %v2521_v30 = vld [vmem:[#allocation10 + $0x44] sm:$0xf] }
 0x105   : > { %v725_v21 = vpop.f32.mrf.mxu2 }
 0x106   : > { %v774_v23 = vpop.f32.mrf.mxu3 }
 0x107   : > { %v707_v31 = vpop.f32.mrf.mxu0  ;;  %v775_v59 = vadd.f32 %v774_v23, %v3271_v28 }
 0x108   : > { %v708_v32 = vadd.f32 %v707_v31, %v3269_v27  ;;  %v756_v33 = vpop.f32.mrf.mxu1 }
 0x109   : > { %v757_v34 = vadd.f32 %v756_v33, %v3271_v28  ;;  %v2354_v33 = vld [vmem:[#allocation10 + $0x48] sm:$0xf0]  ;;  %v811_v63 = vmax.f32 %v775_v59, 0.0 }
 0x10a   : > { %v796_v36 = vmax.f32 %v708_v32, 0.0  ;;  %v2353_v32 = vor.u32 %v2522_v29, %v2352_v26  ;;  %v2516_v26 = vld [vmem:[#allocation10 + $0x14] sm:$0xf0] }
 0x10b   : > { %v797_v38 = vmax.f32 %v757_v34, 0.0  ;;  %v2357_v34 = vor.u32 %v2521_v30, %v2354_v33 }
 0x10c   : > { %v826_v41 = vpack.c.bf16 %v796_v36, %v794_v35  ;;  %1445 = vmatpush.bf16.msra.mxu2 %v2353_v32 }
 0x10d   : > { %v827_v45 = vpack.c.bf16 %v797_v38, %v795_v37  ;;  %1494 = vmatpush.bf16.msra.mxu3 %v2357_v34  ;;  %v727_v35 = vpop.f32.mrf.mxu2 }
 0x10e   : > { %1048 = vmatmul.bf16.vlgmr.msrb.gmra.mxu2 %v826_v41  ;;  %1146 = vmatmul.bf16.vlgmr.msrb.gmra.mxu0 %v826_v41  ;;  %v776_v37 = vpop.f32.mrf.mxu3 }
 0x10f   : > { %1097 = vmatmul.bf16.vlgmr.msrb.gmra.mxu3 %v827_v45  ;;  %1195 = vmatmul.bf16.vlgmr.msrb.gmra.mxu1 %v827_v45  ;;  %v710_v47 = vpop.f32.mrf.mxu0  ;;  %v777_v60 = vadd.f32 %v776_v37, %v3271_v28 }
 0x110   : > { %v759_v48 = vpop.f32.mrf.mxu1  ;;  %v711_v49 = vadd.f32 %v710_v47, %v3269_v27 }
 0x111   : > { %v760_v50 = vadd.f32 %v759_v48, %v3271_v28  ;;  %v813_v0 = vmax.f32 %v777_v60, 0.0  ;;  %v2322_v60 = vld [vmem:[#allocation10 + $0x8] sm:$0xf0] }
 0x112   : > { %v798_v55 = vmax.f32 %v711_v49, 0.0 }
 0x113   : > { %v799_v57 = vmax.f32 %v760_v50, 0.0  ;;  %v2344_v50 = vld [vmem:[#allocation10 + $0x30] sm:$0xf]  ;;  %v835_v4 = vpack.c.bf16 %v813_v0, %v811_v63 }
 0x115   : > { %v730_v49 = vpop.f32.mrf.mxu2 }
 0x117   : > { %v712_v51 = vpop.f32.mrf.mxu0 }
 0x118   : > { %v713_v52 = vadd.f32 %v712_v51, %v3269_v27  ;;  %v761_v53 = vpop.f32.mrf.mxu1  ;;  %v2520_v51 = vld [vmem:[#allocation10 + $0x34] sm:$0xf0] }
 0x119   : > { %v762_v54 = vadd.f32 %v761_v53, %v3271_v28  ;;  %v779_v53 = vpop.f32.mrf.mxu3 }
 0x11a   : > { %v800_v56 = vmax.f32 %v713_v52, 0.0  ;;  %v2519_v52 = vld [vmem:[#allocation10 + $0x34] sm:$0xf] }
 0x11b   : > { %v801_v58 = vmax.f32 %v762_v54, 0.0  ;;  %v2345_v54 = vor.u32 %v2520_v51, %v2344_v50 }
 0x11c   : > { %v828_v61 = vpack.c.bf16 %v800_v56, %v798_v55  ;;  %v2346_v55 = vld [vmem:[#allocation10 + $0x38] sm:$0xf0] }
 0x11d   : > { %v829_v1 = vpack.c.bf16 %v801_v58, %v799_v57  ;;  %v2349_v56 = vor.u32 %v2519_v52, %v2346_v55  ;;  %1446 = vmatpush.bf16.msra.mxu2 %v2345_v54  ;;  %v726_v57 = vadd.f32 %v725_v21, %v3269_v27  ;;  %v728_v58 = vadd.f32 %v727_v35, %v3269_v27 }
 0x11e   : > { %1053 = vmatmul.bf16.gmra.mxu2 %v828_v61  ;;  %1151 = vmatmul.bf16.gmra.mxu0 %v828_v61 }
 0x11f   : > { %1102 = vmatmul.bf16.gmra.mxu3 %v829_v1  ;;  %1200 = vmatmul.bf16.gmra.mxu1 %v829_v1  ;;  %v715_v3 = vpop.f32.mrf.mxu0  ;;  %v810_v61 = vmax.f32 %v726_v57, 0.0  ;;  %v812_v62 = vmax.f32 %v728_v58, 0.0  ;;  %v732_v1 = vpop.f32.mrf.mxu2  ;;  %v2514_v57 = vld [vmem:[#allocation10 + $0x4] sm:$0xf0]  ;;  %v2513_v58 = vld [vmem:[#allocation10 + $0x4] sm:$0xf] }
 0x120   : > { %v764_v7 = vpop.f32.mrf.mxu1  ;;  %v716_v11 = vadd.f32 %v715_v3, %v3269_v27  ;;  %1495 = vmatpush.bf16.msra.mxu3 %v2349_v56 }
 0x121   : > { %v765_v12 = vadd.f32 %v764_v7, %v3271_v28  ;;  %v781_v2 = vpop.f32.mrf.mxu3  ;;  %v834_v3 = vpack.c.bf16 %v812_v62, %v810_v61  ;;  %v2517_v7 = vld [vmem:[#allocation10 + $0x24] sm:$0xf]  ;;  %1447 = vmatpush.bf16.msra.mxu2 %v2337_v8  ;;  %v2325_v61 = vor.u32 %v2513_v58, %v2322_v60  ;;  %v1239_v58 = vld [vmem:[%s3240_s25 + $0x18] sm:$0xff] }
 0x122   : > { %v802_v17 = vmax.f32 %v716_v11, 0.0  ;;  %v2341_v10 = vor.u32 %v2517_v7, %v2338_v9 }
 0x123   : > { %v803_v19 = vmax.f32 %v765_v12, 0.0  ;;  %v731_v12 = vadd.f32 %v730_v49, %v3269_v27 }
 0x124   : > { %1496 = vmatpush.bf16.msra.mxu3 %v2341_v10 }
 0x127   : > { %v717_v13 = vpop.f32.mrf.mxu0  ;;  %v735_v11 = vpop.f32.mrf.mxu2 }
 0x128   : > { %v718_v14 = vadd.f32 %v717_v13, %v3269_v27  ;;  %v766_v15 = vpop.f32.mrf.mxu1  ;;  %v733_v13 = vadd.f32 %v732_v1, %v3269_v27  ;;  %v736_v30 = vadd.f32 %v735_v11, %v3269_v27 }
 0x129   : > { %v767_v16 = vadd.f32 %v766_v15, %v3271_v28  ;;  %v780_v15 = vadd.f32 %v779_v53, %v3271_v28 }
 0x12a   : > { %v804_v18 = vmax.f32 %v718_v14, 0.0  ;;  %v784_v14 = vpop.f32.mrf.mxu3  ;;  %v818_v35 = vmax.f32 %v736_v30, 0.0 }
 0x12b   : > { %v805_v20 = vmax.f32 %v767_v16, 0.0  ;;  %v782_v16 = vadd.f32 %v781_v2, %v3271_v28  ;;  %v785_v32 = vadd.f32 %v784_v14, %v3271_v28 }
 0x12c   : > { %v830_v22 = vpack.c.bf16 %v804_v18, %v802_v17  ;;  %v814_v17 = vmax.f32 %v731_v12, 0.0  ;;  %v816_v18 = vmax.f32 %v733_v13, 0.0 }
 0x12d   : > { %v831_v24 = vpack.c.bf16 %v805_v20, %v803_v19  ;;  %v815_v19 = vmax.f32 %v780_v15, 0.0  ;;  %v817_v20 = vmax.f32 %v782_v16, 0.0 }
 0x12e   : > { %1058 = vmatmul.bf16.gmra.mxu2 %v830_v22  ;;  %1156 = vmatmul.bf16.gmra.mxu0 %v830_v22  ;;  %v836_v21 = vpack.c.bf16 %v816_v18, %v814_v17 }
 0x12f   : > { %1107 = vmatmul.bf16.gmra.mxu3 %v831_v24  ;;  %1205 = vmatmul.bf16.gmra.mxu1 %v831_v24  ;;  %v720_v25 = vpop.f32.mrf.mxu0  ;;  %v837_v22 = vpack.c.bf16 %v817_v20, %v815_v19  ;;  %v737_v23 = vpop.f32.mrf.mxu2 }
 0x130   : > { %v769_v31 = vpop.f32.mrf.mxu1  ;;  %v721_v36 = vadd.f32 %v720_v25, %v3269_v27  ;;  %v2328_v25 = vld [vmem:[#allocation10 + $0x10] sm:$0xf] }
 0x131   : > { %v770_v38 = vadd.f32 %v769_v31, %v3271_v28  ;;  %v2329_v29 = vor.u32 %v2516_v26, %v2328_v25  ;;  %v738_v31 = vadd.f32 %v737_v23, %v3269_v27  ;;  %v1237_v26 = vld [vmem:[%s3240_s25 + $0x8] sm:$0xff] }
 0x132   : > { %v806_v43 = vmax.f32 %v721_v36, 0.0  ;;  %v786_v24 = vpop.f32.mrf.mxu3 }
 0x133   : > { %v807_v45 = vmax.f32 %v770_v38, 0.0  ;;  %1448 = vmatpush.bf16.msra.mxu2 %v2329_v29  ;;  %v787_v33 = vadd.f32 %v786_v24, %v3271_v28  ;;  %v820_v36 = vmax.f32 %v738_v31, 0.0  ;;  %v819_v38 = vmax.f32 %v785_v32, 0.0  ;;  %v1236_v24 = vld [vmem:[%s3240_s25] sm:$0xff] }
 0x137   : > { %v722_v39 = vpop.f32.mrf.mxu0  ;;  %v740_v34 = vpop.f32.mrf.mxu2 }
 0x138   : > { %v723_v40 = vadd.f32 %v722_v39, %v3269_v27  ;;  %v771_v41 = vpop.f32.mrf.mxu1  ;;  %v821_v39 = vmax.f32 %v787_v33, 0.0 }
 0x139   : > { %v772_v42 = vadd.f32 %v771_v41, %v3271_v28 }
 0x13a   : > { %v808_v44 = vmax.f32 %v723_v40, 0.0  ;;  %v789_v37 = vpop.f32.mrf.mxu3  ;;  %v838_v40 = vpack.c.bf16 %v820_v36, %v818_v35  ;;  %v839_v41 = vpack.c.bf16 %v821_v39, %v819_v38 }
 0x13b   : > { %v809_v46 = vmax.f32 %v772_v42, 0.0 }
 0x13c   : > { %v832_v47 = vpack.c.bf16 %v808_v44, %v806_v43  ;;  %v741_v44 = vadd.f32 %v740_v34, %v3269_v27 }
 0x13d   : > { %v833_v48 = vpack.c.bf16 %v809_v46, %v807_v45  ;;  %v2515_v46 = vld [vmem:[#allocation10 + $0x14] sm:$0xf] }
 0x13e   : > { %1063 = vmatmul.bf16.gmra.mxu2 %v832_v47  ;;  %1161 = vmatmul.bf16.gmra.mxu0 %v832_v47  ;;  %v2330_v47 = vld [vmem:[#allocation10 + $0x18] sm:$0xf0]  ;;  %v822_v51 = vmax.f32 %v741_v44, 0.0 }
 0x13f   : > { %1112 = vmatmul.bf16.gmra.mxu3 %v833_v48  ;;  %1210 = vmatmul.bf16.gmra.mxu1 %v833_v48  ;;  %v742_v42 = vpop.f32.mrf.mxu2  ;;  %v790_v48 = vadd.f32 %v789_v37, %v3271_v28  ;;  %v2333_v50 = vor.u32 %v2515_v46, %v2330_v47  ;;  %v2544_v44 = vld [vmem:[#allocation11 + $0x78] sm:$0xff] }
 0x140   : > { %v743_v45 = vadd.f32 %v742_v42, %v3269_v27  ;;  %v2320_v27 = vld [vmem:[#allocation10] sm:$0xf]  ;;  %1769 = vmatpush.bf16.msra.mxu1 %v2544_v44  ;;  %v2542_v44 = vld [vmem:[#allocation11 + $0x68] sm:$0xff] }
 0x141   : > { %1497 = vmatpush.bf16.msra.mxu3 %v2333_v50  ;;  %v823_v53 = vmax.f32 %v790_v48, 0.0  ;;  %v2321_v59 = vor.u32 %v2514_v57, %v2320_v27  ;;  %v1238_v27 = vld [vmem:[%s3240_s25 + $0x10] sm:$0xff] }
 0x142   : > { %v791_v43 = vpop.f32.mrf.mxu3  ;;  %v824_v52 = vmax.f32 %v743_v45, 0.0 }
 0x143   : > { %v792_v49 = vadd.f32 %v791_v43, %v3271_v28  ;;  %v874_v28 = vld [vmem:[%s3530_s5] sm:$0x3]  ;;  %1449 = vmatpush.bf16.msra.mxu2 %v2321_v59  ;;  %v2536_v43 = vld [vmem:[#allocation11 + $0x38] sm:$0xff] }
 0x144   : > { %v840_v55 = vpack.c.bf16 %v824_v52, %v822_v51  ;;  %v3308_v62 = vperm.slane %v874_v28, 1  ;;  %1720 = vmatpush.bf16.msra.mxu0 %v2536_v43  ;;  %v2534_v43 = vld [vmem:[#allocation11 + $0x28] sm:$0xff] }
 0x145   : > { %v825_v54 = vmax.f32 %v792_v49, 0.0  ;;  %1498 = vmatpush.bf16.msra.mxu3 %v2325_v61 }
 0x147   : > { %v841_v56 = vpack.c.bf16 %v825_v54, %v823_v53 }
 0x14e   : > { %1068 = vmatmul.bf16.gmra.mxu2 %v834_v3  ;;  %1166 = vmatmul.bf16.gmra.mxu0 %v834_v3  ;;  %v3312_v3 = vperm.slane %v874_v28, 0 }
 0x14f   : > { %1117 = vmatmul.bf16.gmra.mxu3 %v835_v4  ;;  %1215 = vmatmul.bf16.gmra.mxu1 %v835_v4 }
 0x15e   : > { %1073 = vmatmul.bf16.gmra.mxu2 %v836_v21  ;;  %1171 = vmatmul.bf16.gmra.mxu0 %v836_v21 }
 0x15f   : > { %1122 = vmatmul.bf16.gmra.mxu3 %v837_v22  ;;  %1220 = vmatmul.bf16.gmra.mxu1 %v837_v22 }
 0x16e   : > { %1078 = vmatmul.bf16.gmra.mxu2 %v838_v40  ;;  %1176 = vmatmul.bf16.gmra.mxu0 %v838_v40 }
 0x16f   : > { %1127 = vmatmul.bf16.gmra.mxu3 %v839_v41  ;;  %1225 = vmatmul.bf16.gmra.mxu1 %v839_v41 }
 0x17e   : > { %1083 = vmatmul.bf16.gmra.mxu2 %v840_v55  ;;  %1181 = vmatmul.bf16.gmra.mxu0 %v840_v55 }
 0x17f   : > { %1132 = vmatmul.bf16.gmra.mxu3 %v841_v56  ;;  %1230 = vmatmul.bf16.gmra.mxu1 %v841_v56 }
 0x18b   : > { %v1147_v63 = vpop.f32.mrf.mxu0 }
 0x18c   : > { %v1148_v0 = vadd.f32 %v1147_v63, %v3308_v62  ;;  %v1196_v1 = vpop.f32.mrf.mxu1 }
 0x18e   : > { %v1197_v2 = vadd.f32 %v1196_v1, %v1148_v0 }
 0x190   : > { %v1252_v4 = vmul.f32 0.5, %v1197_v2  ;;  %1835 = vst [vmem:[%s3314_s8 + $0x8] sm:$0xff] %v1197_v2 }
 0x191   : > { %v1049_v5 = vpop.f32.mrf.mxu2 }
 0x192   : > { %v1050_v6 = vadd.f32 %v1049_v5, %v3312_v3  ;;  %v1098_v7 = vpop.f32.mrf.mxu3  ;;  %v1268_v9 = vmul.f32 1.442695, %v1252_v4 }
 0x193   : > { %v1149_v8 = vpop.f32.mrf.mxu0 }
 0x194   : > { %v1099_v10 = vadd.f32 %v1098_v7, %v1050_v6  ;;  %v1150_v11 = vadd.f32 %v1149_v8, %v3308_v62  ;;  %v1198_v12 = vpop.f32.mrf.mxu1  ;;  %2670 = vpow2.f32 %v1268_v9 }
 0x196   : > { %1834 = vst [vmem:[%s3314_s8] sm:$0xff] %v1099_v10  ;;  %v1199_v13 = vadd.f32 %v1198_v12, %v1150_v11  ;;  %v2543_v11 = vld [vmem:[#allocation11 + $0x70] sm:$0xff] }
 0x197   : > { %1770 = vmatpush.bf16.msra.mxu1 %v2543_v11  ;;  %v2541_v11 = vld [vmem:[#allocation11 + $0x60] sm:$0xff] }
 0x198   : > { %v1253_v14 = vmul.f32 0.5, %v1199_v13  ;;  %1837 = vst [vmem:[%s3314_s8 + $0x18] sm:$0xff] %v1199_v13 }
 0x199   : > { %v1051_v15 = vpop.f32.mrf.mxu2 }
 0x19a   : > { %v1270_v16 = vmul.f32 1.442695, %v1253_v14  ;;  %v1052_v17 = vadd.f32 %v1051_v15, %v3312_v3  ;;  %v1100_v18 = vpop.f32.mrf.mxu3  ;;  %v2671_v23 = vpop.eup %2670 }
 0x19b   : > { %v1152_v19 = vpop.f32.mrf.mxu0  ;;  %v1300_v30 = vmul.f32 %v2671_v23, %v1236_v24  ;;  %v1240_v24 = vld [vmem:[%s3240_s25 + $0x20] sm:$0xff]  ;;  %1771 = vmatpush.bf16.msra.mxu1 %v2542_v44  ;;  %v2540_v44 = vld [vmem:[#allocation11 + $0x58] sm:$0xff] }
 0x19c   : > { %2672 = vpow2.f32 %v1270_v16  ;;  %v1101_v20 = vadd.f32 %v1100_v18, %v1052_v17  ;;  %v1153_v21 = vadd.f32 %v1152_v19, %v3308_v62  ;;  %v1201_v22 = vpop.f32.mrf.mxu1 }
 0x19d   : > { %v1316_v41 = vadd.f32 %v1300_v30, %v1099_v10  ;;  %v2535_v10 = vld [vmem:[#allocation11 + $0x30] sm:$0xff] }
 0x19e   : > { %1836 = vst [vmem:[%s3314_s8 + $0x10] sm:$0xff] %v1101_v20  ;;  %v1202_v25 = vadd.f32 %v1201_v22, %v1153_v21  ;;  %1721 = vmatpush.bf16.msra.mxu0 %v2535_v10  ;;  %v2533_v10 = vld [vmem:[#allocation11 + $0x20] sm:$0xff] }
 0x19f   : > { %1772 = vmatpush.bf16.msra.mxu1 %v2541_v11  ;;  %v2539_v11 = vld [vmem:[#allocation11 + $0x50] sm:$0xff] }
 0x1a0   : > { %v1254_v29 = vmul.f32 0.5, %v1202_v25  ;;  %1839 = vst [vmem:[%s3314_s8 + $0x28] sm:$0xff] %v1202_v25 }
 0x1a1   : > { %v1054_v31 = vpop.f32.mrf.mxu2 }
 0x1a2   : > { %v2673_v32 = vpop.eup %2672  ;;  %v1055_v33 = vadd.f32 %v1054_v31, %v3312_v3  ;;  %v1103_v34 = vpop.f32.mrf.mxu3  ;;  %v1272_v37 = vmul.f32 1.442695, %v1254_v29  ;;  %1722 = vmatpush.bf16.msra.mxu0 %v2534_v43  ;;  %v2532_v43 = vld [vmem:[#allocation11 + $0x18] sm:$0xff] }
 0x1a3   : > { %v1301_v35 = vmul.f32 %v2673_v32, %v1237_v26  ;;  %v1154_v36 = vpop.f32.mrf.mxu0  ;;  %v1241_v26 = vld [vmem:[%s3240_s25 + $0x28] sm:$0xff]  ;;  %1773 = vmatpush.bf16.msra.mxu1 %v2540_v44 }
 0x1a4   : > { %v1104_v38 = vadd.f32 %v1103_v34, %v1055_v33  ;;  %v1155_v39 = vadd.f32 %v1154_v36, %v3308_v62  ;;  %v1203_v40 = vpop.f32.mrf.mxu1  ;;  %2674 = vpow2.f32 %v1272_v37 }
 0x1a5   : > { %v1317_v42 = vadd.f32 %v1301_v35, %v1101_v20 }
 0x1a6   : > { %1838 = vst [vmem:[%s3314_s8 + $0x20] sm:$0xff] %v1104_v38  ;;  %v1204_v45 = vadd.f32 %v1203_v40, %v1155_v39  ;;  %1723 = vmatpush.bf16.msra.mxu0 %v2533_v10  ;;  %v2531_v10 = vld [vmem:[#allocation11 + $0x10] sm:$0xff] }
 0x1a7   : > { %v1332_v46 = vpack.c.bf16 %v1317_v42, %v1316_v41  ;;  %1774 = vmatpush.bf16.msra.mxu1 %v2539_v11 }
 0x1a8   : > { %v1255_v47 = vmul.f32 0.5, %v1204_v45  ;;  %1841 = vst [vmem:[%s3314_s8 + $0x38] sm:$0xff] %v1204_v45 }
 0x1a9   : > { %v1056_v48 = vpop.f32.mrf.mxu2  ;;  %1450 = vmatmul.bf16.vlgmr.msra.gmra.mxu2 %v1332_v46  ;;  %1499 = vmatmul.bf16.vlgmr.msra.gmra.mxu3 %v1332_v46 }
 0x1aa   : > { %v1274_v49 = vmul.f32 1.442695, %v1255_v47  ;;  %v1057_v50 = vadd.f32 %v1056_v48, %v3312_v3  ;;  %v1105_v51 = vpop.f32.mrf.mxu3  ;;  %v2675_v56 = vpop.eup %2674  ;;  %1724 = vmatpush.bf16.msra.mxu0 %v2532_v43 }
 0x1ab   : > { %v1157_v52 = vpop.f32.mrf.mxu0  ;;  %v1302_v59 = vmul.f32 %v2675_v56, %v1238_v27  ;;  %v1242_v27 = vld [vmem:[%s3240_s25 + $0x30] sm:$0xff] }
 0x1ac   : > { %2676 = vpow2.f32 %v1274_v49  ;;  %v1106_v53 = vadd.f32 %v1105_v51, %v1057_v50  ;;  %v1158_v54 = vadd.f32 %v1157_v52, %v3308_v62  ;;  %v1206_v55 = vpop.f32.mrf.mxu1 }
 0x1ad   : > { %v1318_v8 = vadd.f32 %v1302_v59, %v1104_v38 }
 0x1ae   : > { %1840 = vst [vmem:[%s3314_s8 + $0x30] sm:$0xff] %v1106_v53  ;;  %v1207_v57 = vadd.f32 %v1206_v55, %v1158_v54  ;;  %1725 = vmatpush.bf16.msra.mxu0 %v2531_v10 }
 0x1b0   : > { %v1256_v28 = vmul.f32 0.5, %v1207_v57  ;;  %1843 = vst [vmem:[%s3314_s8 + $0x48] sm:$0xff] %v1207_v57 }
 0x1b1   : > { %v1059_v60 = vpop.f32.mrf.mxu2 }
 0x1b2   : > { %v2677_v61 = vpop.eup %2676  ;;  %v1060_v63 = vadd.f32 %v1059_v60, %v3312_v3  ;;  %v1108_v0 = vpop.f32.mrf.mxu3  ;;  %v1276_v4 = vmul.f32 1.442695, %v1256_v28 }
 0x1b3   : > { %v1303_v1 = vmul.f32 %v2677_v61, %v1239_v58  ;;  %v1159_v2 = vpop.f32.mrf.mxu0  ;;  %v1243_v58 = vld [vmem:[%s3240_s25 + $0x38] sm:$0xff] }
 0x1b4   : > { %v1109_v5 = vadd.f32 %v1108_v0, %v1060_v63  ;;  %v1160_v6 = vadd.f32 %v1159_v2, %v3308_v62  ;;  %v1208_v7 = vpop.f32.mrf.mxu1  ;;  %2678 = vpow2.f32 %v1276_v4 }
 0x1b5   : > { %v1319_v9 = vadd.f32 %v1303_v1, %v1106_v53 }
 0x1b6   : > { %1842 = vst [vmem:[%s3314_s8 + $0x40] sm:$0xff] %v1109_v5  ;;  %v1209_v12 = vadd.f32 %v1208_v7, %v1160_v6 }
 0x1b7   : > { %v1333_v13 = vpack.c.bf16 %v1319_v9, %v1318_v8 }
 0x1b8   : > { %v1257_v14 = vmul.f32 0.5, %v1209_v12  ;;  %1845 = vst [vmem:[%s3314_s8 + $0x58] sm:$0xff] %v1209_v12 }
 0x1b9   : > { %v1061_v15 = vpop.f32.mrf.mxu2  ;;  %1455 = vmatmul.bf16.gmra.mxu2 %v1333_v13  ;;  %1504 = vmatmul.bf16.gmra.mxu3 %v1333_v13 }
 0x1ba   : > { %v1278_v16 = vmul.f32 1.442695, %v1257_v14  ;;  %v1062_v17 = vadd.f32 %v1061_v15, %v3312_v3  ;;  %v1110_v18 = vpop.f32.mrf.mxu3  ;;  %v2679_v23 = vpop.eup %2678 }
 0x1bb   : > { %v1162_v19 = vpop.f32.mrf.mxu0  ;;  %v1304_v30 = vmul.f32 %v2679_v23, %v1240_v24  ;;  %v1244_v24 = vld [vmem:[%s3240_s25 + $0x40] sm:$0xff] }
 0x1bc   : > { %2680 = vpow2.f32 %v1278_v16  ;;  %v1111_v20 = vadd.f32 %v1110_v18, %v1062_v17  ;;  %v1163_v21 = vadd.f32 %v1162_v19, %v3308_v62  ;;  %v1211_v22 = vpop.f32.mrf.mxu1 }
 0x1bd   : > { %v1320_v41 = vadd.f32 %v1304_v30, %v1109_v5 }
 0x1be   : > { %1844 = vst [vmem:[%s3314_s8 + $0x50] sm:$0xff] %v1111_v20  ;;  %v1212_v25 = vadd.f32 %v1211_v22, %v1163_v21 }
 0x1c0   : > { %v1258_v29 = vmul.f32 0.5, %v1212_v25  ;;  %1847 = vst [vmem:[%s3314_s8 + $0x68] sm:$0xff] %v1212_v25 }
 0x1c1   : > { %v1064_v31 = vpop.f32.mrf.mxu2 }
 0x1c2   : > { %v2681_v32 = vpop.eup %2680  ;;  %v1065_v33 = vadd.f32 %v1064_v31, %v3312_v3  ;;  %v1113_v34 = vpop.f32.mrf.mxu3  ;;  %v1280_v37 = vmul.f32 1.442695, %v1258_v29 }
 0x1c3   : > { %v1305_v35 = vmul.f32 %v2681_v32, %v1241_v26  ;;  %v1164_v36 = vpop.f32.mrf.mxu0  ;;  %v1245_v26 = vld [vmem:[%s3240_s25 + $0x48] sm:$0xff] }
 0x1c4   : > { %v1114_v38 = vadd.f32 %v1113_v34, %v1065_v33  ;;  %v1165_v39 = vadd.f32 %v1164_v36, %v3308_v62  ;;  %v1213_v40 = vpop.f32.mrf.mxu1  ;;  %2682 = vpow2.f32 %v1280_v37 }
 0x1c5   : > { %v1321_v42 = vadd.f32 %v1305_v35, %v1111_v20 }
 0x1c6   : > { %1846 = vst [vmem:[%s3314_s8 + $0x60] sm:$0xff] %v1114_v38  ;;  %v1214_v45 = vadd.f32 %v1213_v40, %v1165_v39 }
 0x1c7   : > { %v1334_v46 = vpack.c.bf16 %v1321_v42, %v1320_v41 }
 0x1c8   : > { %v1259_v47 = vmul.f32 0.5, %v1214_v45  ;;  %1849 = vst [vmem:[%s3314_s8 + $0x78] sm:$0xff] %v1214_v45 }
 0x1c9   : > { %v1066_v48 = vpop.f32.mrf.mxu2  ;;  %1460 = vmatmul.bf16.gmra.mxu2 %v1334_v46  ;;  %1509 = vmatmul.bf16.gmra.mxu3 %v1334_v46 }
 0x1ca   : > { %v1282_v49 = vmul.f32 1.442695, %v1259_v47  ;;  %v1067_v50 = vadd.f32 %v1066_v48, %v3312_v3  ;;  %v1115_v51 = vpop.f32.mrf.mxu3  ;;  %v2683_v56 = vpop.eup %2682 }
 0x1cb   : > { %v1167_v52 = vpop.f32.mrf.mxu0  ;;  %v1306_v59 = vmul.f32 %v2683_v56, %v1242_v27  ;;  %v1246_v27 = vld [vmem:[%s3240_s25 + $0x50] sm:$0xff] }
 0x1cc   : > { %2684 = vpow2.f32 %v1282_v49  ;;  %v1116_v53 = vadd.f32 %v1115_v51, %v1067_v50  ;;  %v1168_v54 = vadd.f32 %v1167_v52, %v3308_v62  ;;  %v1216_v55 = vpop.f32.mrf.mxu1 }
 0x1cd   : > { %v1322_v8 = vadd.f32 %v1306_v59, %v1114_v38 }
 0x1ce   : > { %1848 = vst [vmem:[%s3314_s8 + $0x70] sm:$0xff] %v1116_v53  ;;  %v1217_v57 = vadd.f32 %v1216_v55, %v1168_v54 }
 0x1d0   : > { %v1260_v28 = vmul.f32 0.5, %v1217_v57  ;;  %1851 = vst [vmem:[%s3314_s8 + $0x88] sm:$0xff] %v1217_v57 }
 0x1d1   : > { %v1069_v60 = vpop.f32.mrf.mxu2 }
 0x1d2   : > { %v2685_v61 = vpop.eup %2684  ;;  %v1070_v63 = vadd.f32 %v1069_v60, %v3312_v3  ;;  %v1118_v0 = vpop.f32.mrf.mxu3  ;;  %v1284_v4 = vmul.f32 1.442695, %v1260_v28 }
 0x1d3   : > { %v1307_v1 = vmul.f32 %v2685_v61, %v1243_v58  ;;  %v1169_v2 = vpop.f32.mrf.mxu0  ;;  %v1247_v58 = vld [vmem:[%s3240_s25 + $0x58] sm:$0xff] }
 0x1d4   : > { %v1119_v5 = vadd.f32 %v1118_v0, %v1070_v63  ;;  %v1170_v6 = vadd.f32 %v1169_v2, %v3308_v62  ;;  %v1218_v7 = vpop.f32.mrf.mxu1  ;;  %2686 = vpow2.f32 %v1284_v4 }
 0x1d5   : > { %v1323_v9 = vadd.f32 %v1307_v1, %v1116_v53 }
 0x1d6   : > { %1850 = vst [vmem:[%s3314_s8 + $0x80] sm:$0xff] %v1119_v5  ;;  %v1219_v12 = vadd.f32 %v1218_v7, %v1170_v6 }
 0x1d7   : > { %v1335_v13 = vpack.c.bf16 %v1323_v9, %v1322_v8 }
 0x1d8   : > { %v1261_v14 = vmul.f32 0.5, %v1219_v12  ;;  %1853 = vst [vmem:[%s3314_s8 + $0x98] sm:$0xff] %v1219_v12 }
 0x1d9   : > { %v1071_v15 = vpop.f32.mrf.mxu2  ;;  %1465 = vmatmul.bf16.gmra.mxu2 %v1335_v13  ;;  %1514 = vmatmul.bf16.gmra.mxu3 %v1335_v13 }
 0x1da   : > { %v1286_v16 = vmul.f32 1.442695, %v1261_v14  ;;  %v1072_v17 = vadd.f32 %v1071_v15, %v3312_v3  ;;  %v1120_v18 = vpop.f32.mrf.mxu3  ;;  %v2687_v23 = vpop.eup %2686 }
 0x1db   : > { %v1172_v19 = vpop.f32.mrf.mxu0  ;;  %v1308_v30 = vmul.f32 %v2687_v23, %v1244_v24 }
 0x1dc   : > { %2688 = vpow2.f32 %v1286_v16  ;;  %v1121_v20 = vadd.f32 %v1120_v18, %v1072_v17  ;;  %v1173_v21 = vadd.f32 %v1172_v19, %v3308_v62  ;;  %v1221_v22 = vpop.f32.mrf.mxu1  ;;  %v2530_v16 = vld [vmem:[#allocation11 + $0x8] sm:$0xff] }
 0x1dd   : > { %v1324_v41 = vadd.f32 %v1308_v30, %v1119_v5  ;;  %v2538_v17 = vld [vmem:[#allocation11 + $0x48] sm:$0xff]  ;;  %1726 = vmatpush.bf16.msra.mxu0 %v2530_v16 }
 0x1de   : > { %1852 = vst [vmem:[%s3314_s8 + $0x90] sm:$0xff] %v1121_v20  ;;  %v1222_v25 = vadd.f32 %v1221_v22, %v1173_v21  ;;  %1775 = vmatpush.bf16.msra.mxu1 %v2538_v17  ;;  %v2529_v22 = vld [vmem:[#allocation11] sm:$0xff] }
 0x1e0   : > { %v1262_v29 = vmul.f32 0.5, %v1222_v25  ;;  %1855 = vst [vmem:[%s3314_s8 + $0xa8] sm:$0xff] %v1222_v25 }
 0x1e1   : > { %v1074_v31 = vpop.f32.mrf.mxu2  ;;  %1727 = vmatpush.bf16.msra.mxu0 %v2529_v22 }
 0x1e2   : > { %v2689_v32 = vpop.eup %2688  ;;  %v1075_v33 = vadd.f32 %v1074_v31, %v3312_v3  ;;  %v1123_v34 = vpop.f32.mrf.mxu3  ;;  %v1288_v37 = vmul.f32 1.442695, %v1262_v29  ;;  %v1248_v29 = vld [vmem:[%s3240_s25 + $0x60] sm:$0xff]  ;;  %v1249_v31 = vld [vmem:[%s3240_s25 + $0x68] sm:$0xff] }
 0x1e3   : > { %v1309_v35 = vmul.f32 %v2689_v32, %v1245_v26  ;;  %v1174_v36 = vpop.f32.mrf.mxu0 }
 0x1e4   : > { %v1124_v38 = vadd.f32 %v1123_v34, %v1075_v33  ;;  %v1175_v39 = vadd.f32 %v1174_v36, %v3308_v62  ;;  %v1223_v40 = vpop.f32.mrf.mxu1  ;;  %2690 = vpow2.f32 %v1288_v37 }
 0x1e5   : > { %v1325_v42 = vadd.f32 %v1309_v35, %v1121_v20 }
 0x1e6   : > { %1854 = vst [vmem:[%s3314_s8 + $0xa0] sm:$0xff] %v1124_v38  ;;  %v1224_v45 = vadd.f32 %v1223_v40, %v1175_v39 }
 0x1e7   : > { %v1336_v46 = vpack.c.bf16 %v1325_v42, %v1324_v41 }
 0x1e8   : > { %v1263_v47 = vmul.f32 0.5, %v1224_v45  ;;  %1857 = vst [vmem:[%s3314_s8 + $0xb8] sm:$0xff] %v1224_v45 }
 0x1e9   : > { %v1076_v48 = vpop.f32.mrf.mxu2  ;;  %1470 = vmatmul.bf16.gmra.mxu2 %v1336_v46  ;;  %1519 = vmatmul.bf16.gmra.mxu3 %v1336_v46 }
 0x1ea   : > { %v1290_v49 = vmul.f32 1.442695, %v1263_v47  ;;  %v1077_v50 = vadd.f32 %v1076_v48, %v3312_v3  ;;  %v1125_v51 = vpop.f32.mrf.mxu3  ;;  %v2691_v56 = vpop.eup %2690 }
 0x1eb   : > { %v1177_v52 = vpop.f32.mrf.mxu0  ;;  %v1310_v59 = vmul.f32 %v2691_v56, %v1246_v27  ;;  %v1251_v56 = vld [vmem:[%s3240_s25 + $0x78] sm:$0xff] }
 0x1ec   : > { %2692 = vpow2.f32 %v1290_v49  ;;  %v1126_v53 = vadd.f32 %v1125_v51, %v1077_v50  ;;  %v1178_v54 = vadd.f32 %v1177_v52, %v3308_v62  ;;  %v1226_v55 = vpop.f32.mrf.mxu1 }
 0x1ed   : > { %v1326_v8 = vadd.f32 %v1310_v59, %v1124_v38 }
 0x1ee   : > { %1856 = vst [vmem:[%s3314_s8 + $0xb0] sm:$0xff] %v1126_v53  ;;  %v1227_v57 = vadd.f32 %v1226_v55, %v1178_v54  ;;  %v1250_v54 = vld [vmem:[%s3240_s25 + $0x70] sm:$0xff]  ;;  %v2537_v55 = vld [vmem:[#allocation11 + $0x40] sm:$0xff]  ;;  %s2896_s25 = sshra.s32 %s1905_s28, 4  ;;  %s2897_s25 = int_to_ptr.hbm [resolvable:$true] %s2896_s25 }
 0x1ef   : > { %1776 = vmatpush.bf16.msra.mxu1 %v2537_v55  ;;  %s2898_s23 = scalar_lea.hbm %s2897_s25, 256  ;;  %p2903_p2 = scmp.lt.s32.totalorder %s2897_s25, %s3536_s11 }
 0x1f0   : > { %v1264_v28 = vmul.f32 0.5, %v1227_v57  ;;  %1859 = vst [vmem:[%s3314_s8 + $0xc8] sm:$0xff] %v1227_v57  ;;  %p2899_p1 = scmp.ne.s32.totalorder %s2897_s25, %s2898_s23  ;;  %p2904_p10 = scmp.lt.s32.totalorder %s2902_s15, %s2898_s23 }
 0x1f1   : > { %v1079_v60 = vpop.f32.mrf.mxu2 }
 0x1f2   : > { %v2693_v61 = vpop.eup %2692  ;;  %v1080_v63 = vadd.f32 %v1079_v60, %v3312_v3  ;;  %v1128_v0 = vpop.f32.mrf.mxu3  ;;  %v1292_v4 = vmul.f32 1.442695, %v1264_v28  ;;  %p2900_p4 = pnand %p2899_p1, %p3169_p5  ;;  %p2905_p11 = por %p2904_p10, %p2903_p2 }
 0x1f3   : > { %v1311_v1 = vmul.f32 %v2693_v61, %v1247_v58  ;;  %v1179_v2 = vpop.f32.mrf.mxu0 }
 0x1f4   : > { %v1129_v5 = vadd.f32 %v1128_v0, %v1080_v63  ;;  %v1180_v6 = vadd.f32 %v1179_v2, %v3308_v62  ;;  %v1228_v7 = vpop.f32.mrf.mxu1  ;;  %2694 = vpow2.f32 %v1292_v4  ;;  %p2901_p8 = pneg %p2900_p4 }
 0x1f5   : > { %v1327_v9 = vadd.f32 %v1311_v1, %v1126_v53 }
 0x1f6   : > { %1858 = vst [vmem:[%s3314_s8 + $0xc0] sm:$0xff] %v1129_v5  ;;  %v1229_v12 = vadd.f32 %v1228_v7, %v1180_v6  ;;  %p2906_p9 = pnand %p2905_p11, %p2901_p8 }
 0x1f7   : > { %v1337_v13 = vpack.c.bf16 %v1327_v9, %v1326_v8 }
 0x1f8   : > { %v1265_v14 = vmul.f32 0.5, %v1229_v12  ;;  %1861 = vst [vmem:[%s3314_s8 + $0xd8] sm:$0xff] %v1229_v12 }
 0x1f9   : > { %v1081_v15 = vpop.f32.mrf.mxu2  ;;  %1475 = vmatmul.bf16.gmra.mxu2 %v1337_v13  ;;  %1524 = vmatmul.bf16.gmra.mxu3 %v1337_v13 }
 0x1fa   : > { %v1294_v18 = vmul.f32 1.442695, %v1265_v14  ;;  %v1082_v19 = vadd.f32 %v1081_v15, %v3312_v3  ;;  %v1130_v20 = vpop.f32.mrf.mxu3  ;;  %v2695_v26 = vpop.eup %2694 }
 0x1fb   : > { %v1182_v21 = vpop.f32.mrf.mxu0  ;;  %v1312_v33 = vmul.f32 %v2695_v26, %v1248_v29 }
 0x1fc   : > { %2696 = vpow2.f32 %v1294_v18  ;;  %v1131_v23 = vadd.f32 %v1130_v20, %v1082_v19  ;;  %v1183_v24 = vadd.f32 %v1182_v21, %v3308_v62  ;;  %v1231_v25 = vpop.f32.mrf.mxu1 }
 0x1fd   : > { %v1328_v43 = vadd.f32 %v1312_v33, %v1129_v5 }
 0x1fe   : > { %1860 = vst [vmem:[%s3314_s8 + $0xd0] sm:$0xff] %v1131_v23  ;;  %v1232_v30 = vadd.f32 %v1231_v25, %v1183_v24 }
 0x200   : > { %v1266_v32 = vmul.f32 0.5, %v1232_v30  ;;  %1863 = vst [vmem:[%s3314_s8 + $0xe8] sm:$0xff] %v1232_v30 }
 0x201   : > { %v1084_v34 = vpop.f32.mrf.mxu2 }
 0x202   : > { %v2697_v35 = vpop.eup %2696  ;;  %v1085_v36 = vadd.f32 %v1084_v34, %v3312_v3  ;;  %v1133_v37 = vpop.f32.mrf.mxu3  ;;  %v1296_v40 = vmul.f32 1.442695, %v1266_v32 }
 0x203   : > { %v1313_v38 = vmul.f32 %v2697_v35, %v1249_v31  ;;  %v1184_v39 = vpop.f32.mrf.mxu0 }
 0x204   : > { %v1134_v41 = vadd.f32 %v1133_v37, %v1085_v36  ;;  %v1185_v42 = vadd.f32 %v1184_v39, %v3308_v62  ;;  %v1233_v45 = vpop.f32.mrf.mxu1  ;;  %2698 = vpow2.f32 %v1296_v40 }
 0x205   : > { %v1329_v44 = vadd.f32 %v1313_v38, %v1131_v23 }
 0x206   : > { %1862 = vst [vmem:[%s3314_s8 + $0xe0] sm:$0xff] %v1134_v41  ;;  %v1234_v46 = vadd.f32 %v1233_v45, %v1185_v42 }
 0x207   : > { %v1338_v47 = vpack.c.bf16 %v1329_v44, %v1328_v43 }
 0x208   : > { %v1267_v48 = vmul.f32 0.5, %v1234_v46  ;;  %1865 = vst [vmem:[%s3314_s8 + $0xf8] sm:$0xff] %v1234_v46 }
 0x209   : > { %v1086_v49 = vpop.f32.mrf.mxu2  ;;  %1480 = vmatmul.bf16.gmra.mxu2 %v1338_v47  ;;  %1529 = vmatmul.bf16.gmra.mxu3 %v1338_v47 }
 0x20a   : > { %v1298_v50 = vmul.f32 1.442695, %v1267_v48  ;;  %v1087_v51 = vadd.f32 %v1086_v49, %v3312_v3  ;;  %v1135_v52 = vpop.f32.mrf.mxu3  ;;  %v2699_v53 = vpop.eup %2698  ;;  %v1356_v3 = vld [vmem:[%s3532_s7] sm:$0x3] }
 0x20b   : > { %v1314_v27 = vmul.f32 %v2699_v53, %v1250_v54  ;;  %v3398_v0 = vperm.slane %v1356_v3, 0  ;;  %v3400_v1 = vperm.slane %v1356_v3, 1 }
 0x20c   : > { %2700 = vpow2.f32 %v1298_v50  ;;  %v1136_v62 = vadd.f32 %v1135_v52, %v1087_v51 }
 0x20d   : > { %v1330_v28 = vadd.f32 %v1314_v27, %v1134_v41 }
 0x20e   : > { %1864 = vst [vmem:[%s3314_s8 + $0xf0] sm:$0xff] %v1136_v62 }
 0x212   : > { %v2701_v57 = vpop.eup %2700 }
 0x213   : > { %v1315_v58 = vmul.f32 %v2701_v57, %v1251_v56 }
 0x215   : > { %v1331_v59 = vadd.f32 %v1315_v58, %v1136_v62 }
 0x217   : > { %v1339_v60 = vpack.c.bf16 %v1331_v59, %v1330_v28 }
 0x219   : > { %1485 = vmatmul.bf16.gmra.mxu2 %v1339_v60  ;;  %1534 = vmatmul.bf16.gmra.mxu3 %v1339_v60 }
 0x22c   : > { %v1451_v61 = vpop.f32.mrf.mxu2  ;;  %v1500_v63 = vpop.f32.mrf.mxu3 }
 0x22d   : > { %v1452_v2 = vadd.f32 %v1451_v61, %v3398_v0  ;;  %v1501_v4 = vadd.f32 %v1500_v63, %v3400_v1 }
 0x22f   : > { %v1540_v9 = vmax.f32 %v1452_v2, 0.0  ;;  %v1541_v10 = vmax.f32 %v1501_v4, 0.0 }
 0x234   : > { %v1453_v5 = vpop.f32.mrf.mxu2  ;;  %v1502_v6 = vpop.f32.mrf.mxu3 }
 0x235   : > { %v1454_v7 = vadd.f32 %v1453_v5, %v3398_v0  ;;  %v1503_v8 = vadd.f32 %v1502_v6, %v3400_v1 }
 0x237   : > { %v1542_v11 = vmax.f32 %v1454_v7, 0.0  ;;  %v1543_v12 = vmax.f32 %v1503_v8, 0.0 }
 0x239   : > { %v1572_v13 = vpack.c.bf16 %v1542_v11, %v1540_v9  ;;  %v1573_v14 = vpack.c.bf16 %v1543_v12, %v1541_v10 }
 0x23b   : > { %1728 = vmatmul.bf16.vlgmr.msra.gmra.mxu0 %v1572_v13  ;;  %1777 = vmatmul.bf16.vlgmr.msra.gmra.mxu1 %v1573_v14 }
 0x23c   : > { %v1456_v15 = vpop.f32.mrf.mxu2  ;;  %v1505_v16 = vpop.f32.mrf.mxu3 }
 0x23d   : > { %v1457_v17 = vadd.f32 %v1456_v15, %v3398_v0  ;;  %v1506_v18 = vadd.f32 %v1505_v16, %v3400_v1 }
 0x23f   : > { %v1544_v23 = vmax.f32 %v1457_v17, 0.0  ;;  %v1545_v24 = vmax.f32 %v1506_v18, 0.0 }
 0x244   : > { %v1458_v19 = vpop.f32.mrf.mxu2  ;;  %v1507_v20 = vpop.f32.mrf.mxu3 }
 0x245   : > { %v1459_v21 = vadd.f32 %v1458_v19, %v3398_v0  ;;  %v1508_v22 = vadd.f32 %v1507_v20, %v3400_v1 }
 0x247   : > { %v1546_v25 = vmax.f32 %v1459_v21, 0.0  ;;  %v1547_v26 = vmax.f32 %v1508_v22, 0.0 }
 0x249   : > { %v1574_v29 = vpack.c.bf16 %v1546_v25, %v1544_v23  ;;  %v1575_v30 = vpack.c.bf16 %v1547_v26, %v1545_v24 }
 0x24b   : > { %1733 = vmatmul.bf16.gmra.mxu0 %v1574_v29  ;;  %1782 = vmatmul.bf16.gmra.mxu1 %v1575_v30 }
 0x24c   : > { %v1461_v31 = vpop.f32.mrf.mxu2  ;;  %v1510_v32 = vpop.f32.mrf.mxu3 }
 0x24d   : > { %v1462_v33 = vadd.f32 %v1461_v31, %v3398_v0  ;;  %v1511_v34 = vadd.f32 %v1510_v32, %v3400_v1 }
 0x24f   : > { %v1548_v39 = vmax.f32 %v1462_v33, 0.0  ;;  %v1549_v40 = vmax.f32 %v1511_v34, 0.0 }
 0x254   : > { %v1463_v35 = vpop.f32.mrf.mxu2  ;;  %v1512_v36 = vpop.f32.mrf.mxu3 }
 0x255   : > { %v1464_v37 = vadd.f32 %v1463_v35, %v3398_v0  ;;  %v1513_v38 = vadd.f32 %v1512_v36, %v3400_v1 }
 0x257   : > { %v1550_v41 = vmax.f32 %v1464_v37, 0.0  ;;  %v1551_v42 = vmax.f32 %v1513_v38, 0.0 }
 0x259   : > { %v1576_v43 = vpack.c.bf16 %v1550_v41, %v1548_v39  ;;  %v1577_v44 = vpack.c.bf16 %v1551_v42, %v1549_v40 }
 0x25b   : > { %1738 = vmatmul.bf16.gmra.mxu0 %v1576_v43  ;;  %1787 = vmatmul.bf16.gmra.mxu1 %v1577_v44 }
 0x25c   : > { %v1466_v45 = vpop.f32.mrf.mxu2  ;;  %v1515_v46 = vpop.f32.mrf.mxu3 }
 0x25d   : > { %v1467_v47 = vadd.f32 %v1466_v45, %v3398_v0  ;;  %v1516_v48 = vadd.f32 %v1515_v46, %v3400_v1 }
 0x25f   : > { %v1552_v62 = vmax.f32 %v1467_v47, 0.0  ;;  %v1553_v53 = vmax.f32 %v1516_v48, 0.0 }
 0x264   : > { %v1468_v49 = vpop.f32.mrf.mxu2  ;;  %v1517_v50 = vpop.f32.mrf.mxu3 }
 0x265   : > { %v1469_v51 = vadd.f32 %v1468_v49, %v3398_v0  ;;  %v1518_v52 = vadd.f32 %v1517_v50, %v3400_v1 }
 0x267   : > { %v1554_v54 = vmax.f32 %v1469_v51, 0.0  ;;  %v1555_v55 = vmax.f32 %v1518_v52, 0.0 }
 0x269   : > { %v1578_v56 = vpack.c.bf16 %v1554_v54, %v1552_v62  ;;  %v1579_v27 = vpack.c.bf16 %v1555_v55, %v1553_v53  ;;  %v3438_v62 = vld [vmem:[%s3534_s9] ss:$0 sm:$0xff] }
 0x26b   : > { %1743 = vmatmul.bf16.gmra.mxu0 %v1578_v56  ;;  %1792 = vmatmul.bf16.gmra.mxu1 %v1579_v27 }
 0x26c   : > { %v1471_v57 = vpop.f32.mrf.mxu2  ;;  %v1520_v58 = vpop.f32.mrf.mxu3 }
 0x26d   : > { %v1472_v28 = vadd.f32 %v1471_v57, %v3398_v0  ;;  %v1521_v59 = vadd.f32 %v1520_v58, %v3400_v1 }
 0x26f   : > { %v1556_v2 = vmax.f32 %v1472_v28, 0.0  ;;  %v1557_v4 = vmax.f32 %v1521_v59, 0.0 }
 0x274   : > { %v1473_v60 = vpop.f32.mrf.mxu2  ;;  %v1522_v3 = vpop.f32.mrf.mxu3 }
 0x275   : > { %v1474_v61 = vadd.f32 %v1473_v60, %v3398_v0  ;;  %v1523_v63 = vadd.f32 %v1522_v3, %v3400_v1 }
 0x277   : > { %v1558_v5 = vmax.f32 %v1474_v61, 0.0  ;;  %v1559_v6 = vmax.f32 %v1523_v63, 0.0 }
 0x279   : > { %v1580_v7 = vpack.c.bf16 %v1558_v5, %v1556_v2  ;;  %v1581_v8 = vpack.c.bf16 %v1559_v6, %v1557_v4 }
 0x27b   : > { %1748 = vmatmul.bf16.gmra.mxu0 %v1580_v7  ;;  %1797 = vmatmul.bf16.gmra.mxu1 %v1581_v8 }
 0x27c   : > { %v1476_v9 = vpop.f32.mrf.mxu2  ;;  %v1525_v10 = vpop.f32.mrf.mxu3 }
 0x27d   : > { %v1477_v11 = vadd.f32 %v1476_v9, %v3398_v0  ;;  %v1526_v12 = vadd.f32 %v1525_v10, %v3400_v1 }
 0x27f   : > { %v1560_v17 = vmax.f32 %v1477_v11, 0.0  ;;  %v1561_v18 = vmax.f32 %v1526_v12, 0.0 }
 0x284   : > { %v1478_v13 = vpop.f32.mrf.mxu2  ;;  %v1527_v14 = vpop.f32.mrf.mxu3 }
 0x285   : > { %v1479_v15 = vadd.f32 %v1478_v13, %v3398_v0  ;;  %v1528_v16 = vadd.f32 %v1527_v14, %v3400_v1 }
 0x287   : > { %v1562_v19 = vmax.f32 %v1479_v15, 0.0  ;;  %v1563_v20 = vmax.f32 %v1528_v16, 0.0 }
 0x289   : > { %v1582_v21 = vpack.c.bf16 %v1562_v19, %v1560_v17  ;;  %v1583_v22 = vpack.c.bf16 %v1563_v20, %v1561_v18 }
 0x28b   : > { %1753 = vmatmul.bf16.gmra.mxu0 %v1582_v21  ;;  %1802 = vmatmul.bf16.gmra.mxu1 %v1583_v22 }
 0x28c   : > { %v1481_v23 = vpop.f32.mrf.mxu2  ;;  %v1530_v24 = vpop.f32.mrf.mxu3 }
 0x28d   : > { %v1482_v25 = vadd.f32 %v1481_v23, %v3398_v0  ;;  %v1531_v26 = vadd.f32 %v1530_v24, %v3400_v1 }
 0x28f   : > { %v1564_v33 = vmax.f32 %v1482_v25, 0.0  ;;  %v1565_v34 = vmax.f32 %v1531_v26, 0.0 }
 0x294   : > { %v1483_v29 = vpop.f32.mrf.mxu2  ;;  %v1532_v30 = vpop.f32.mrf.mxu3 }
 0x295   : > { %v1484_v31 = vadd.f32 %v1483_v29, %v3398_v0  ;;  %v1533_v32 = vadd.f32 %v1532_v30, %v3400_v1 }
 0x297   : > { %v1566_v35 = vmax.f32 %v1484_v31, 0.0  ;;  %v1567_v36 = vmax.f32 %v1533_v32, 0.0 }
 0x299   : > { %v1584_v37 = vpack.c.bf16 %v1566_v35, %v1564_v33  ;;  %v1585_v38 = vpack.c.bf16 %v1567_v36, %v1565_v34 }
 0x29b   : > { %1758 = vmatmul.bf16.gmra.mxu0 %v1584_v37  ;;  %1807 = vmatmul.bf16.gmra.mxu1 %v1585_v38 }
 0x29c   : > { %v1486_v39 = vpop.f32.mrf.mxu2  ;;  %v1535_v40 = vpop.f32.mrf.mxu3 }
 0x29d   : > { %v1487_v41 = vadd.f32 %v1486_v39, %v3398_v0  ;;  %v1536_v42 = vadd.f32 %v1535_v40, %v3400_v1 }
 0x29f   : > { %v1568_v47 = vmax.f32 %v1487_v41, 0.0  ;;  %v1569_v48 = vmax.f32 %v1536_v42, 0.0 }
 0x2a4   : > { %v1488_v43 = vpop.f32.mrf.mxu2  ;;  %v1537_v44 = vpop.f32.mrf.mxu3 }
 0x2a5   : > { %v1489_v45 = vadd.f32 %v1488_v43, %v3398_v0  ;;  %v1538_v46 = vadd.f32 %v1537_v44, %v3400_v1 }
 0x2a7   : > { %v1570_v49 = vmax.f32 %v1489_v45, 0.0  ;;  %v1571_v50 = vmax.f32 %v1538_v46, 0.0 }
 0x2a9   : > { %v1586_v51 = vpack.c.bf16 %v1570_v49, %v1568_v47  ;;  %v1587_v52 = vpack.c.bf16 %v1571_v50, %v1569_v48 }
 0x2ab   : > { %1763 = vmatmul.bf16.gmra.mxu0 %v1586_v51  ;;  %1812 = vmatmul.bf16.gmra.mxu1 %v1587_v52 }
 0x2b8   : > { %v1729_v0 = vpop.f32.mrf.mxu0  ;;  %v1778_v1 = vpop.f32.mrf.mxu1 }
 0x2b9   : > { %v1730_v53 = vadd.f32 %v3438_v62, %v1729_v0 }
 0x2bb   : > { %v1779_v54 = vadd.f32 %v1778_v1, %v1730_v53 }
 0x2bc   : > { %2909 = shalt.err (!%p2906_p9)
}
 0x2bd   : > { %s3006_s8 = smov 256   ;;  %s3007_s26 = smov 16  }
 0x2be   : > { %2585 = dma.vmem_to_hbm [thread:$0]  (%p3169_p5), %s1903_s16, 4096, %s1905_s28, %s1872_s27, %s3006_s8, %s3006_s8, %s3007_s26  }
 0x2bf   : > { %s3458_s17 = scalar_lea.vmem [#allocation13], %s2087_s29  ;;  %s2545_s29 = sshll.u32 %s3091_s21, 7 }
 0x2c0   : > { %1818 = vst [vmem:[%s3458_s17] sm:$0xff] %v1779_v54  ;;  %v1731_v55 = vpop.f32.mrf.mxu0  ;;  %v1780_v56 = vpop.f32.mrf.mxu1  ;;  %s3571_s6 = sld [smem:[#allocation32_spill]]  ;;  %s1884_s30 = sshll.u32 %s3458_s17, 4  ;;  %s1885_s30 = int_to_ptr.vmem [resolvable:$true] %s1884_s30 }
 0x2c1   : > { %v1732_v27 = vadd.f32 %v3438_v62, %v1731_v55  ;;  %s1867_s28 = scalar_lea.sflag [#allocation4], %s3226_s10 }
 0x2c3   : > { %v1781_v57 = vadd.f32 %v1780_v56, %v1732_v27 }
 0x2c5   : > { %1819 = vst [vmem:[%s3458_s17 + $0x8] sm:$0xff] %v1781_v57 }
 0x2c6   : > { %s1883_s12 = scalar_lea.hbm %s3571_s6, %s2545_s29  ;;  %s2930_s24 = scalar_lea.hbm %s3571_s6, 256 }
 0x2c7   : > { %s1886_s16 = sshll.u32 %s1883_s12, 4  ;;  %s1887_s16 = int_to_ptr.hbm [resolvable:$true] %s1886_s16 }
 0x2c8   : > { %v1734_v58 = vpop.f32.mrf.mxu0  ;;  %v1783_v28 = vpop.f32.mrf.mxu1  ;;  %s2924_s27 = sshra.s32 %s1887_s16, 4  ;;  %s2925_s27 = int_to_ptr.hbm [resolvable:$true] %s2924_s27 }
 0x2c9   : > { %v1735_v59 = vadd.f32 %v3438_v62, %v1734_v58  ;;  %s2926_s21 = scalar_lea.hbm %s2925_s27, 128  ;;  %p2931_p3 = scmp.lt.s32.totalorder %s2925_s27, %s3571_s6 }
 0x2ca   : > { %p2927_p12 = scmp.ne.s32.totalorder %s2925_s27, %s2926_s21  ;;  %p2932_p7 = scmp.lt.s32.totalorder %s2930_s24, %s2926_s21 }
 0x2cb   : > { %v1784_v60 = vadd.f32 %v1783_v28, %v1735_v59 }
 0x2cc   : > { %p2928_p13 = pnand %p2927_p12, %p3169_p5  ;;  %p2933_p1 = por %p2932_p7, %p2931_p3 }
 0x2cd   : > { %1820 = vst [vmem:[%s3458_s17 + $0x10] sm:$0xff] %v1784_v60 }
 0x2ce   : > { %p2929_p0 = pneg %p2928_p13 }
 0x2d0   : > { %v1736_v3 = vpop.f32.mrf.mxu0  ;;  %v1785_v61 = vpop.f32.mrf.mxu1  ;;  %p2934_p4 = pnand %p2933_p1, %p2929_p0 }
 0x2d1   : > { %v1737_v63 = vadd.f32 %v3438_v62, %v1736_v3 }
 0x2d3   : > { %v1786_v2 = vadd.f32 %v1785_v61, %v1737_v63 }
 0x2d5   : > { %1821 = vst [vmem:[%s3458_s17 + $0x18] sm:$0xff] %v1786_v2 }
 0x2d8   : > { %v1739_v4 = vpop.f32.mrf.mxu0  ;;  %v1788_v5 = vpop.f32.mrf.mxu1 }
 0x2d9   : > { %v1740_v6 = vadd.f32 %v3438_v62, %v1739_v4 }
 0x2db   : > { %v1789_v7 = vadd.f32 %v1788_v5, %v1740_v6 }
 0x2dd   : > { %1822 = vst [vmem:[%s3458_s17 + $0x20] sm:$0xff] %v1789_v7 }
 0x2e0   : > { %v1741_v8 = vpop.f32.mrf.mxu0  ;;  %v1790_v9 = vpop.f32.mrf.mxu1 }
 0x2e1   : > { %v1742_v10 = vadd.f32 %v3438_v62, %v1741_v8 }
 0x2e3   : > { %v1791_v11 = vadd.f32 %v1790_v9, %v1742_v10 }
 0x2e5   : > { %1823 = vst [vmem:[%s3458_s17 + $0x28] sm:$0xff] %v1791_v11 }
 0x2e8   : > { %v1744_v12 = vpop.f32.mrf.mxu0  ;;  %v1793_v13 = vpop.f32.mrf.mxu1 }
 0x2e9   : > { %v1745_v14 = vadd.f32 %v3438_v62, %v1744_v12 }
 0x2eb   : > { %v1794_v15 = vadd.f32 %v1793_v13, %v1745_v14 }
 0x2ed   : > { %1824 = vst [vmem:[%s3458_s17 + $0x30] sm:$0xff] %v1794_v15 }
 0x2f0   : > { %v1746_v16 = vpop.f32.mrf.mxu0  ;;  %v1795_v17 = vpop.f32.mrf.mxu1 }
 0x2f1   : > { %v1747_v18 = vadd.f32 %v3438_v62, %v1746_v16 }
 0x2f3   : > { %v1796_v19 = vadd.f32 %v1795_v17, %v1747_v18 }
 0x2f5   : > { %1825 = vst [vmem:[%s3458_s17 + $0x38] sm:$0xff] %v1796_v19 }
 0x2f8   : > { %v1749_v20 = vpop.f32.mrf.mxu0  ;;  %v1798_v21 = vpop.f32.mrf.mxu1 }
 0x2f9   : > { %v1750_v22 = vadd.f32 %v3438_v62, %v1749_v20 }
 0x2fb   : > { %v1799_v23 = vadd.f32 %v1798_v21, %v1750_v22 }
 0x2fd   : > { %1826 = vst [vmem:[%s3458_s17 + $0x40] sm:$0xff] %v1799_v23 }
 0x300   : > { %v1751_v24 = vpop.f32.mrf.mxu0  ;;  %v1800_v25 = vpop.f32.mrf.mxu1 }
 0x301   : > { %v1752_v26 = vadd.f32 %v3438_v62, %v1751_v24 }
 0x303   : > { %v1801_v29 = vadd.f32 %v1800_v25, %v1752_v26 }
 0x305   : > { %1827 = vst [vmem:[%s3458_s17 + $0x48] sm:$0xff] %v1801_v29 }
 0x308   : > { %v1754_v30 = vpop.f32.mrf.mxu0  ;;  %v1803_v31 = vpop.f32.mrf.mxu1 }
 0x309   : > { %v1755_v32 = vadd.f32 %v3438_v62, %v1754_v30 }
 0x30b   : > { %v1804_v33 = vadd.f32 %v1803_v31, %v1755_v32 }
 0x30d   : > { %1828 = vst [vmem:[%s3458_s17 + $0x50] sm:$0xff] %v1804_v33 }
 0x310   : > { %v1756_v34 = vpop.f32.mrf.mxu0  ;;  %v1805_v35 = vpop.f32.mrf.mxu1 }
 0x311   : > { %v1757_v36 = vadd.f32 %v3438_v62, %v1756_v34 }
 0x313   : > { %v1806_v37 = vadd.f32 %v1805_v35, %v1757_v36 }
 0x315   : > { %1829 = vst [vmem:[%s3458_s17 + $0x58] sm:$0xff] %v1806_v37 }
 0x318   : > { %v1759_v38 = vpop.f32.mrf.mxu0  ;;  %v1808_v39 = vpop.f32.mrf.mxu1 }
 0x319   : > { %v1760_v40 = vadd.f32 %v3438_v62, %v1759_v38 }
 0x31b   : > { %v1809_v41 = vadd.f32 %v1808_v39, %v1760_v40 }
 0x31d   : > { %1830 = vst [vmem:[%s3458_s17 + $0x60] sm:$0xff] %v1809_v41 }
 0x320   : > { %v1761_v42 = vpop.f32.mrf.mxu0  ;;  %v1810_v43 = vpop.f32.mrf.mxu1 }
 0x321   : > { %v1762_v44 = vadd.f32 %v3438_v62, %v1761_v42 }
 0x323   : > { %v1811_v45 = vadd.f32 %v1810_v43, %v1762_v44 }
 0x325   : > { %1831 = vst [vmem:[%s3458_s17 + $0x68] sm:$0xff] %v1811_v45 }
 0x328   : > { %v1764_v46 = vpop.f32.mrf.mxu0  ;;  %v1813_v47 = vpop.f32.mrf.mxu1 }
 0x329   : > { %v1765_v48 = vadd.f32 %v3438_v62, %v1764_v46 }
 0x32b   : > { %v1814_v49 = vadd.f32 %v1813_v47, %v1765_v48 }
 0x32d   : > { %1832 = vst [vmem:[%s3458_s17 + $0x70] sm:$0xff] %v1814_v49 }
 0x330   : > { %v1766_v50 = vpop.f32.mrf.mxu0  ;;  %v1815_v52 = vpop.f32.mrf.mxu1 }
 0x331   : > { %v1767_v51 = vadd.f32 %v3438_v62, %v1766_v50 }
 0x333   : > { %v1816_v0 = vadd.f32 %v1815_v52, %v1767_v51 }
 0x335   : > { %1833 = vst [vmem:[%s3458_s17 + $0x78] sm:$0xff] %v1816_v0 }
 0x336   : > { %2937 = shalt.err (!%p2934_p4)
}
 0x337   : > { %s3008_s10 = smov 128   ;;  %s3009_s14 = smov 8  }
 0x338   : > { %2584 = dma.vmem_to_hbm [thread:$0]  (%p3169_p5), %s1885_s30, 2048, %s1887_s16, %s1867_s28, %s3008_s10, %s3008_s10, %s3009_s14  }
 0x339 PF: > { %s3572_s22 = sld [smem:[#allocation23_spill]]  ;;  %p3574_p8 = scmp.ge.s32.totalorder %s2996_s20, 2 }
 0x33b   : > { %p2609_p2 = pnand %p3574_p8, %p3105_p6 }
 0x33d   : > { %p2610_p10 = pneg %p2609_p2 }
 0x33f   : > { %s1919_s26 = sand.u32 1, %s3572_s22  }
 0x340   : > { %s1920_s17 = scalar_lea.sflag [#allocation4], %s1919_s26 }
 0x341   : > { %2975 = dma.done.wait (%p2610_p10), %s1920_s17, 2048  }
 0x342   : > { %2977 = vsyncadd (%p2610_p10), %s1920_s17, 4294965248  ;;  %s1930_s29 = scalar_lea.sflag [#allocation15], %s1919_s26 }
 0x343   : > { %2979 = dma.done.wait (%p2610_p10), %s1930_s29, 4096  }
 0x344   : > { %2981 = vsyncadd (%p2610_p10), %s1930_s29, 4294963200  ;;  %s3575_s20 = sld [smem:[#allocation26_spill]]  ;;  %s3578_s17 = smov %s2988_s18 }
 0x345   : > { %s3576_s13 = sld [smem:[#allocation24_spill]] }
 0x346   : > { %s3577_s19 = sld [smem:[#allocation27_spill]] }
 0x34a   : > { %p33_p5 = scmp.ge.s32.totalorder %s3575_s20, 4  }
 0x34b   : > { %s3579_s18 = smov %s3576_s13 }
 0x34c   :  { %35 = sbr.rel (!%p33_p5) target bundleno = 17 (0x11), region = 151 }
 0x351   :  { %1936 = vsyncpa [#allocation3], 1 }
 0x352   :  { %1938 = vsyncpa [#allocation3 + $0x1], 1 }
 0x353   :  { %1939 = vsyncpa [#allocation6], 1 }
 0x354   :  { %1941 = vsyncpa [#allocation6 + $0x1], 1 }
 0x355   :  { %1942 = vsyncpa [#allocation9], 1 }
 0x356   :  { %1943 = vsyncpa [#allocation12], 1 }
 0x357   :  { %1944 = vsyncpa [#allocation4], 1 }
 0x358   :  { %1946 = vsyncpa [#allocation4 + $0x1], 1 }
 0x359   :  { %1947 = vsyncpa [#allocation15], 1 }
 0x35a   :  { %1949 = vsyncpa [#allocation15 + $0x1], 1 }

</bundles_post_ra>
